<compile_context>
chip_gen: v7x
topology: tpu7x:2x2x1
jax: 0.10.0
libtpu: 0.0.40
codegen_flags: <defaults>
</compile_context>

<pallas_src>
import functools

import jax
import jax.numpy as jnp
from jax import lax
from jax.experimental import pallas as pl
from jax.experimental.pallas import tpu as pltpu

KSIZE = 7
PAD = 3


def _vmem_capacity_bytes():
    try:
        return int(pltpu.get_tpu_info().vmem_capacity_bytes)
    except Exception:
        return 64 * 1024 * 1024   # v7x per-core VMEM: smallest of v5e/v6e/v7x


def _choose_blocks(N, C, H, HW, WPAD, itemsize, flat):
    """Pick (NB, CB) so the real VMEM footprint fits the hardware budget."""
    cap = _vmem_capacity_bytes()
    budget = cap // 2   # leave headroom for Mosaic-internal scratch / spills

    def usage(nb, cb):
        return (3 * nb * cb * HW * itemsize              # x chunk (up to 3 buffers)
                + 2 * nb * H * WPAD * itemsize           # output block (2 buffers)
                + 2 * (2 * KSIZE) * WPAD * WPAD * 4      # banded conv matrices
                + 2 * nb * HW * 4                        # running sum/max scratch
                + 2 * nb * (H + 2 * PAD) * WPAD * 4)     # padded-feature scratch

    # Keep >= min(N, 4) batch steps: lets megacore shard the "parallel" axis
    # (v7x) and keeps the input DMA pipelined even for small batches.
    nb_cap = max(1, N // min(N, 4))
    nb_opts = [d for d in range(nb_cap, 0, -1) if N % d == 0]
    if flat:
        # x block is (NB, CB, HW): CB is the sublane dim -> CB == C or CB % 8 == 0.
        cb_opts = [d for d in range(C, 0, -1)
                   if C % d == 0 and (d == C or d % 8 == 0)]
    else:
        cb_opts = [d for d in range(C, 0, -1) if C % d == 0]

    nb = nb_opts[0]
    cb = cb_opts[0]
    for d in cb_opts:               # shrink the C chunk first (keeps batch parallelism)
        cb = d
        if usage(nb, cb) <= budget:
            break
    for d in nb_opts:               # then the batch block
        nb = d
        if usage(nb, cb) <= budget:
            break
    # TODO(synk): if usage(1, min cb) still exceeds the budget (huge H*W), add
    # an output-row (H) tile axis as well.
    return nb, cb, usage(nb, cb), cap


def _build_banded_weights(conv_w, W, WPAD):
    """14 banded (WPAD, WPAD) matrices so that y_row = f_row @ B performs the
    1-D width convolution with its zero padding baked in:

      B[c*7 + dh, p, q] = w[c, dh, p - q + PAD]  if 0 <= p - q + PAD < 7
                                                 and p < W and q < W
                        = 0                       otherwise
    """
    w = conv_w.reshape(2, KSIZE, KSIZE).astype(jnp.float32)
    p = jnp.arange(WPAD)[:, None]
    q = jnp.arange(WPAD)[None, :]
    dw = p - q + PAD
    valid = (dw >= 0) & (dw < KSIZE) & (p < W) & (q < W)
    bands = jnp.where(valid[None, None], w[:, :, jnp.clip(dw, 0, KSIZE - 1)], 0.0)
    return bands.reshape(2 * KSIZE, WPAD, WPAD)
    # TODO(synk): for very large W (WPAD >> 128) these dense banded matrices
    # waste VMEM/MXU; switch to a block-banded / shifted-slab formulation.


def _spatial_attention_kernel(b_ref, x_ref, o_ref, sum_ref, max_ref, pad_ref,
                              *, C, H, W, flat, c_steps):
    """Grid = (batch blocks ["parallel"], C chunks ["arbitrary"]).

    b_ref   : VMEM (14, WPAD, WPAD) f32   banded conv matrices (constant)
    x_ref   : VMEM (NB, CB, H*W) [flat] or (NB, CB, H, W)  input chunk
    o_ref   : VMEM (NB, H, WPAD)          output block (x.dtype)
    sum_ref : VMEM f32 running channel-sum (pooled-chunk shaped)
    max_ref : VMEM f32 running channel-max
    pad_ref : VMEM (2*NB, H + 2*PAD, WPAD) f32 row-padded pooled features
    """
    NB = x_ref.shape[0]
    CB = x_ref.shape[1]
    WPAD = o_ref.shape[-1]
    ci = pl.program_id(1)

    # ---- streaming channel pooling: each x element is read exactly once, ----
    # ---- running f32 sum & max updated together (no f32 chunk temp).     ----
    def accumulate(s, m, c_lo):
        if CB <= 8:                              # static unroll, LLO visibility
            for c in range(c_lo, CB):
                xc = x_ref[:, c].astype(jnp.float32)
                s = s + xc
                m = jnp.maximum(m, xc)
            return s, m

        def body(c, carry):
            s_, m_ = carry
            xc = x_ref[:, c].astype(jnp.float32)
            return s_ + xc, jnp.maximum(m_, xc)
        return lax.fori_loop(c_lo, CB, body, (s, m), unroll=4)

    if c_steps == 1:
        x0 = x_ref[:, 0].astype(jnp.float32)
        s, m = accumulate(x0, x0, 1)
    else:
        @pl.when(ci == 0)
        def _init():
            sum_ref[...] = jnp.zeros_like(sum_ref)
            max_ref[...] = jnp.full_like(max_ref, -jnp.inf)

        s, m = accumulate(sum_ref[...], max_ref[...], 0)

        @pl.when(ci < c_steps - 1)               # carry partials to next C chunk
        def _carry():
            sum_ref[...] = s
            max_ref[...] = m

    # ---- epilogue (last C chunk): layout bridge + banded MXU conv + store ----
    def epilogue():
        avg = s * (1.0 / C)
        mx = m

        # One bulk zero covers the top/bottom halo rows AND the tail lanes
        # [W, WPAD): the MXU never multiplies stale Inf/NaN scratch, and the
        # padded output bytes stay deterministic (exactly sigmoid(0) = 0.5).
        pad_ref[...] = jnp.zeros_like(pad_ref)
        if flat:
            # flat (NB, H*W) pooled rows -> (H, W) interior at lane offset 0
            # (the width boundary lives in B, so the stores are lane-aligned).
            # TODO(synk): collapse into a single avg.reshape(NB, H, W) store
            # once Mosaic's lane->(sublane, lane) reshape is verified on all
            # target generations.
            for h in range(H):
                sl = slice(h * W, (h + 1) * W)
                pad_ref[0:NB, PAD + h, 0:W] = avg[:, sl]
                pad_ref[NB:2 * NB, PAD + h, 0:W] = mx[:, sl]
        else:
            # W is already lane-aligned (W == WPAD): single unmasked store.
            pad_ref[0:NB, PAD:PAD + H, :] = avg
            pad_ref[NB:2 * NB, PAD:PAD + H, :] = mx

        # 7x7 conv over 2 channels = 14 banded MXU matmuls:
        #   y[(n, h), q] += pad[c*NB + n, h + dh, p] * B[c*7 + dh, p, q]
        if H % 8 == 0:
            y = jnp.zeros((NB * H, WPAD), jnp.float32)
            for c in range(2):
                for dh in range(KSIZE):
                    slab = pad_ref[c * NB:(c + 1) * NB, dh:dh + H, :]
                    y = y + jnp.dot(slab.reshape(NB * H, WPAD),
                                    b_ref[c * KSIZE + dh],
                                    preferred_element_type=jnp.float32)
            o_ref[...] = jax.nn.sigmoid(y).reshape(NB, H, WPAD).astype(o_ref.dtype)
        else:
            for n in range(NB):                  # rare path: keep operands 2-D
                y = jnp.zeros((H, WPAD), jnp.float32)
                for c in range(2):
                    for dh in range(KSIZE):
                        y = y + jnp.dot(pad_ref[c * NB + n, dh:dh + H, :],
                                        b_ref[c * KSIZE + dh],
                                        preferred_element_type=jnp.float32)
                o_ref[n] = jax.nn.sigmoid(y).astype(o_ref.dtype)

    if c_steps == 1:
        epilogue()
    else:
        pl.when(ci == c_steps - 1)(epilogue)


def spatial_attention(x, conv_w):
    """x: (N, C, H, W). conv_w: (1, 2, 7, 7) OIHW, no bias. Returns (N, 1, H, W)."""
    N, C, H, W = x.shape
    HW = H * W
    WPAD = ((W + 127) // 128) * 128
    assert WPAD % 128 == 0 and WPAD >= W     # lane-dense output / banded-matmul invariant
    flat = (W % 128 != 0)                    # flatten HW for lane-dense pooling?

    NB, CB, vmem_used, vmem_cap = _choose_blocks(
        N, C, H, HW, WPAD, x.dtype.itemsize, flat)
    grid = (N // NB, C // CB)

    bands = _build_banded_weights(conv_w, W, WPAD)           # (14, WPAD, WPAD) f32

    if flat:
        x_in = x.reshape(N, C, HW)                           # lane-dense pooling view
        x_block = (NB, CB, HW)
        x_map = lambda i, ci: (i, ci, 0)
        pooled_shape = (NB, HW)
    else:
        x_in = x                                             # W already lane-aligned
        x_block = (NB, CB, H, W)
        x_map = lambda i, ci: (i, ci, 0, 0)
        pooled_shape = (NB, H, W)

    x_spec_kwargs = {}
    if grid[0] * grid[1] >= 3:
        # Enough steps for a third input buffer to hide DMA jitter (v7x).
        x_spec_kwargs["pipeline_mode"] = pl.Buffered(3)
    x_spec = pl.BlockSpec(x_block, x_map, **x_spec_kwargs)

    vmem_limit = int(min(vmem_cap, max(2 * vmem_used, 32 * 1024 * 1024)))

    kernel = functools.partial(_spatial_attention_kernel,
                               C=C, H=H, W=W, flat=flat, c_steps=C // CB)

    y = pl.pallas_call(
        kernel,
        out_shape=jax.ShapeDtypeStruct((N, H, WPAD), x.dtype),
        grid=grid,
        in_specs=[
            pl.BlockSpec((2 * KSIZE, WPAD, WPAD), lambda i, ci: (0, 0, 0)),
            x_spec,
        ],
        out_specs=pl.BlockSpec((NB, H, WPAD), lambda i, ci: (i, 0, 0)),
        scratch_shapes=[
            pltpu.VMEM(pooled_shape, jnp.float32),           # running channel sum
            pltpu.VMEM(pooled_shape, jnp.float32),           # running channel max
            pltpu.VMEM((2 * NB, H + 2 * PAD, WPAD), jnp.float32),  # padded features
        ],
        compiler_params=pltpu.CompilerParams(
            dimension_semantics=("parallel", "arbitrary"),
            vmem_limit_bytes=vmem_limit),
    )(bands, x_in)

    # Columns [W, WPAD) hold exactly sigmoid(0) = 0.5; slice them off.
    return y[:, :, :W].reshape(N, 1, H, W)


def _reference(x, conv_w):
    avg = jnp.mean(x, axis=1, keepdims=True)
    mx = jnp.max(x, axis=1, keepdims=True)
    f = jnp.concatenate([avg, mx], axis=1)
    y = lax.conv_general_dilated(
        f, conv_w, window_strides=(1, 1),
        padding=[(PAD, PAD), (PAD, PAD)],
        dimension_numbers=("NCHW", "OIHW", "NCHW"))
    return jax.nn.sigmoid(y)


if __name__ == "__main__":
    key = jax.random.PRNGKey(0)
    kx, kw = jax.random.split(key)

    N, C, H, W = 2, 4, 16, 16
    x = jax.random.normal(kx, (N, C, H, W), dtype=jnp.float32)

    # Deterministic conv1 weight (1, 2, 7, 7), kaiming-uniform-like bound.
    fan_in = 2 * KSIZE * KSIZE
    bound = 1.0 / (fan_in ** 0.5)
    conv_w = jax.random.uniform(kw, (1, 2, KSIZE, KSIZE),
                                minval=-bound, maxval=bound, dtype=jnp.float32)

    out = spatial_attention(x, conv_w)
    out = jax.block_until_ready(out)

    ref = _reference(x, conv_w)
    assert out.shape == (N, 1, H, W)
    assert jnp.allclose(out, ref, atol=1e-5, rtol=1e-5), "mismatch vs reference"

    print("KERNEL_OK")
</pallas_src>

<mosaic_0001>
module attributes {stable_mosaic.version = 11 : i64} {
  func.func @_spatial_attention_kernel(%arg0: i32, %arg1: i32, %arg2: memref<14x128x128xf32, #tpu.memory_space<vmem>>, %arg3: memref<1x4x256xf32, #tpu.memory_space<vmem>>, %arg4: memref<1x16x128xf32, #tpu.memory_space<vmem>>, %arg5: memref<1x256xf32, #tpu.memory_space<vmem>>, %arg6: memref<1x256xf32, #tpu.memory_space<vmem>>, %arg7: memref<2x22x128xf32, #tpu.memory_space<vmem>>) attributes {dimension_semantics = [#tpu.dimension_semantics<parallel>, #tpu.dimension_semantics<arbitrary>], iteration_bounds = array<i64: 2, 1>, scalar_prefetch = 0 : i64, scratch_operands = 3 : i64, tpu.core_type = #tpu.core_type<tc>, window_params = [{pipeline_mode = #tpu.pipeline_mode<synchronous>, transform_indices = @transform_0, window_bounds = array<i64: 14, 128, 128>}, {transform_indices = @transform_1, window_bounds = array<i64: 1, 4, 256>}, {transform_indices = @transform_2, window_bounds = array<i64: 1, 16, 128>}]} {
    %c0 = arith.constant 0 : index
    %c0_0 = arith.constant 0 : index
    %c0_1 = arith.constant 0 : index
    %0 = vector.load %arg3[%c0, %c0_0, %c0_1] : memref<1x4x256xf32, #tpu.memory_space<vmem>>, vector<1x1x256xf32>
    %1 = vector.shape_cast %0 : vector<1x1x256xf32> to vector<1x256xf32>
    %c0_2 = arith.constant 0 : index
    %c1 = arith.constant 1 : index
    %c0_3 = arith.constant 0 : index
    %2 = vector.load %arg3[%c0_2, %c1, %c0_3] : memref<1x4x256xf32, #tpu.memory_space<vmem>>, vector<1x1x256xf32>
    %3 = vector.shape_cast %2 : vector<1x1x256xf32> to vector<1x256xf32>
    %4 = arith.addf %1, %3 : vector<1x256xf32>
    %5 = arith.maximumf %1, %3 : vector<1x256xf32>
    %c0_4 = arith.constant 0 : index
    %c2 = arith.constant 2 : index
    %c0_5 = arith.constant 0 : index
    %6 = vector.load %arg3[%c0_4, %c2, %c0_5] : memref<1x4x256xf32, #tpu.memory_space<vmem>>, vector<1x1x256xf32>
    %7 = vector.shape_cast %6 : vector<1x1x256xf32> to vector<1x256xf32>
    %8 = arith.addf %4, %7 : vector<1x256xf32>
    %9 = arith.maximumf %5, %7 : vector<1x256xf32>
    %c0_6 = arith.constant 0 : index
    %c3 = arith.constant 3 : index
    %c0_7 = arith.constant 0 : index
    %10 = vector.load %arg3[%c0_6, %c3, %c0_7] : memref<1x4x256xf32, #tpu.memory_space<vmem>>, vector<1x1x256xf32>
    %11 = vector.shape_cast %10 : vector<1x1x256xf32> to vector<1x256xf32>
    %12 = arith.addf %8, %11 : vector<1x256xf32>
    %13 = arith.maximumf %9, %11 : vector<1x256xf32>
    %cst = arith.constant 2.500000e-01 : f32
    %14 = vector.broadcast %cst : f32 to vector<1x256xf32>
    %15 = arith.mulf %12, %14 : vector<1x256xf32>
    %cst_8 = arith.constant 0.000000e+00 : f32
    %16 = vector.broadcast %cst_8 : f32 to vector<2x22x128xf32>
    %c0_9 = arith.constant 0 : index
    %c0_10 = arith.constant 0 : index
    %c0_11 = arith.constant 0 : index
    %17 = vector.load %arg7[%c0_9, %c0_10, %c0_11] : memref<2x22x128xf32, #tpu.memory_space<vmem>>, vector<2x22x128xf32>
    tpu.vector_store %arg7[%c0_9, %c0_10, %c0_11], %16 {strides = array<i32>} : memref<2x22x128xf32, #tpu.memory_space<vmem>>, vector<2x22x128xf32>,
    %18 = vector.extract_strided_slice %15 {offsets = [0, 0], sizes = [1, 16], strides = [1, 1]} : vector<1x256xf32> to vector<1x16xf32>
    %c0_12 = arith.constant 0 : index
    %c3_13 = arith.constant 3 : index
    %c0_14 = arith.constant 0 : index
    %19 = vector.load %arg7[%c0_12, %c3_13, %c0_14] : memref<2x22x128xf32, #tpu.memory_space<vmem>>, vector<1x1x16xf32>
    %20 = vector.shape_cast %19 : vector<1x1x16xf32> to vector<1x16xf32>
    %21 = vector.shape_cast %18 : vector<1x16xf32> to vector<1x1x16xf32>
    tpu.vector_store %arg7[%c0_12, %c3_13, %c0_14], %21 {strides = array<i32>} : memref<2x22x128xf32, #tpu.memory_space<vmem>>, vector<1x1x16xf32>,
    %22 = vector.extract_strided_slice %13 {offsets = [0, 0], sizes = [1, 16], strides = [1, 1]} : vector<1x256xf32> to vector<1x16xf32>
    %c1_15 = arith.constant 1 : index
    %c3_16 = arith.constant 3 : index
    %c0_17 = arith.constant 0 : index
    %23 = vector.load %arg7[%c1_15, %c3_16, %c0_17] : memref<2x22x128xf32, #tpu.memory_space<vmem>>, vector<1x1x16xf32>
    %24 = vector.shape_cast %23 : vector<1x1x16xf32> to vector<1x16xf32>
    %25 = vector.shape_cast %22 : vector<1x16xf32> to vector<1x1x16xf32>
    tpu.vector_store %arg7[%c1_15, %c3_16, %c0_17], %25 {strides = array<i32>} : memref<2x22x128xf32, #tpu.memory_space<vmem>>, vector<1x1x16xf32>,
    %26 = vector.extract_strided_slice %15 {offsets = [0, 16], sizes = [1, 16], strides = [1, 1]} : vector<1x256xf32> to vector<1x16xf32>
    %c0_18 = arith.constant 0 : index
    %c4 = arith.constant 4 : index
    %c0_19 = arith.constant 0 : index
    %27 = vector.load %arg7[%c0_18, %c4, %c0_19] : memref<2x22x128xf32, #tpu.memory_space<vmem>>, vector<1x1x16xf32>
    %28 = vector.shape_cast %27 : vector<1x1x16xf32> to vector<1x16xf32>
    %29 = vector.shape_cast %26 : vector<1x16xf32> to vector<1x1x16xf32>
    tpu.vector_store %arg7[%c0_18, %c4, %c0_19], %29 {strides = array<i32>} : memref<2x22x128xf32, #tpu.memory_space<vmem>>, vector<1x1x16xf32>,
    %30 = vector.extract_strided_slice %13 {offsets = [0, 16], sizes = [1, 16], strides = [1, 1]} : vector<1x256xf32> to vector<1x16xf32>
    %c1_20 = arith.constant 1 : index
    %c4_21 = arith.constant 4 : index
    %c0_22 = arith.constant 0 : index
    %31 = vector.load %arg7[%c1_20, %c4_21, %c0_22] : memref<2x22x128xf32, #tpu.memory_space<vmem>>, vector<1x1x16xf32>
    %32 = vector.shape_cast %31 : vector<1x1x16xf32> to vector<1x16xf32>
    %33 = vector.shape_cast %30 : vector<1x16xf32> to vector<1x1x16xf32>
    tpu.vector_store %arg7[%c1_20, %c4_21, %c0_22], %33 {strides = array<i32>} : memref<2x22x128xf32, #tpu.memory_space<vmem>>, vector<1x1x16xf32>,
    %34 = vector.extract_strided_slice %15 {offsets = [0, 32], sizes = [1, 16], strides = [1, 1]} : vector<1x256xf32> to vector<1x16xf32>
    %c0_23 = arith.constant 0 : index
    %c5 = arith.constant 5 : index
    %c0_24 = arith.constant 0 : index
    %35 = vector.load %arg7[%c0_23, %c5, %c0_24] : memref<2x22x128xf32, #tpu.memory_space<vmem>>, vector<1x1x16xf32>
    %36 = vector.shape_cast %35 : vector<1x1x16xf32> to vector<1x16xf32>
    %37 = vector.shape_cast %34 : vector<1x16xf32> to vector<1x1x16xf32>
    tpu.vector_store %arg7[%c0_23, %c5, %c0_24], %37 {strides = array<i32>} : memref<2x22x128xf32, #tpu.memory_space<vmem>>, vector<1x1x16xf32>,
    %38 = vector.extract_strided_slice %13 {offsets = [0, 32], sizes = [1, 16], strides = [1, 1]} : vector<1x256xf32> to vector<1x16xf32>
    %c1_25 = arith.constant 1 : index
    %c5_26 = arith.constant 5 : index
    %c0_27 = arith.constant 0 : index
    %39 = vector.load %arg7[%c1_25, %c5_26, %c0_27] : memref<2x22x128xf32, #tpu.memory_space<vmem>>, vector<1x1x16xf32>
    %40 = vector.shape_cast %39 : vector<1x1x16xf32> to vector<1x16xf32>
    %41 = vector.shape_cast %38 : vector<1x16xf32> to vector<1x1x16xf32>
    tpu.vector_store %arg7[%c1_25, %c5_26, %c0_27], %41 {strides = array<i32>} : memref<2x22x128xf32, #tpu.memory_space<vmem>>, vector<1x1x16xf32>,
    %42 = vector.extract_strided_slice %15 {offsets = [0, 48], sizes = [1, 16], strides = [1, 1]} : vector<1x256xf32> to vector<1x16xf32>
    %c0_28 = arith.constant 0 : index
    %c6 = arith.constant 6 : index
    %c0_29 = arith.constant 0 : index
    %43 = vector.load %arg7[%c0_28, %c6, %c0_29] : memref<2x22x128xf32, #tpu.memory_space<vmem>>, vector<1x1x16xf32>
    %44 = vector.shape_cast %43 : vector<1x1x16xf32> to vector<1x16xf32>
    %45 = vector.shape_cast %42 : vector<1x16xf32> to vector<1x1x16xf32>
    tpu.vector_store %arg7[%c0_28, %c6, %c0_29], %45 {strides = array<i32>} : memref<2x22x128xf32, #tpu.memory_space<vmem>>, vector<1x1x16xf32>,
    %46 = vector.extract_strided_slice %13 {offsets = [0, 48], sizes = [1, 16], strides = [1, 1]} : vector<1x256xf32> to vector<1x16xf32>
    %c1_30 = arith.constant 1 : index
    %c6_31 = arith.constant 6 : index
    %c0_32 = arith.constant 0 : index
    %47 = vector.load %arg7[%c1_30, %c6_31, %c0_32] : memref<2x22x128xf32, #tpu.memory_space<vmem>>, vector<1x1x16xf32>
    %48 = vector.shape_cast %47 : vector<1x1x16xf32> to vector<1x16xf32>
    %49 = vector.shape_cast %46 : vector<1x16xf32> to vector<1x1x16xf32>
    tpu.vector_store %arg7[%c1_30, %c6_31, %c0_32], %49 {strides = array<i32>} : memref<2x22x128xf32, #tpu.memory_space<vmem>>, vector<1x1x16xf32>,
    %50 = vector.extract_strided_slice %15 {offsets = [0, 64], sizes = [1, 16], strides = [1, 1]} : vector<1x256xf32> to vector<1x16xf32>
    %c0_33 = arith.constant 0 : index
    %c7 = arith.constant 7 : index
    %c0_34 = arith.constant 0 : index
    %51 = vector.load %arg7[%c0_33, %c7, %c0_34] : memref<2x22x128xf32, #tpu.memory_space<vmem>>, vector<1x1x16xf32>
    %52 = vector.shape_cast %51 : vector<1x1x16xf32> to vector<1x16xf32>
    %53 = vector.shape_cast %50 : vector<1x16xf32> to vector<1x1x16xf32>
    tpu.vector_store %arg7[%c0_33, %c7, %c0_34], %53 {strides = array<i32>} : memref<2x22x128xf32, #tpu.memory_space<vmem>>, vector<1x1x16xf32>,
    %54 = vector.extract_strided_slice %13 {offsets = [0, 64], sizes = [1, 16], strides = [1, 1]} : vector<1x256xf32> to vector<1x16xf32>
    %c1_35 = arith.constant 1 : index
    %c7_36 = arith.constant 7 : index
    %c0_37 = arith.constant 0 : index
    %55 = vector.load %arg7[%c1_35, %c7_36, %c0_37] : memref<2x22x128xf32, #tpu.memory_space<vmem>>, vector<1x1x16xf32>
    %56 = vector.shape_cast %55 : vector<1x1x16xf32> to vector<1x16xf32>
    %57 = vector.shape_cast %54 : vector<1x16xf32> to vector<1x1x16xf32>
    tpu.vector_store %arg7[%c1_35, %c7_36, %c0_37], %57 {strides = array<i32>} : memref<2x22x128xf32, #tpu.memory_space<vmem>>, vector<1x1x16xf32>,
    %58 = vector.extract_strided_slice %15 {offsets = [0, 80], sizes = [1, 16], strides = [1, 1]} : vector<1x256xf32> to vector<1x16xf32>
    %c0_38 = arith.constant 0 : index
    %c8 = arith.constant 8 : index
    %c0_39 = arith.constant 0 : index
    %59 = vector.load %arg7[%c0_38, %c8, %c0_39] : memref<2x22x128xf32, #tpu.memory_space<vmem>>, vector<1x1x16xf32>
    %60 = vector.shape_cast %59 : vector<1x1x16xf32> to vector<1x16xf32>
    %61 = vector.shape_cast %58 : vector<1x16xf32> to vector<1x1x16xf32>
    tpu.vector_store %arg7[%c0_38, %c8, %c0_39], %61 {strides = array<i32>} : memref<2x22x128xf32, #tpu.memory_space<vmem>>, vector<1x1x16xf32>,
    %62 = vector.extract_strided_slice %13 {offsets = [0, 80], sizes = [1, 16], strides = [1, 1]} : vector<1x256xf32> to vector<1x16xf32>
    %c1_40 = arith.constant 1 : index
    %c8_41 = arith.constant 8 : index
    %c0_42 = arith.constant 0 : index
    %63 = vector.load %arg7[%c1_40, %c8_41, %c0_42] : memref<2x22x128xf32, #tpu.memory_space<vmem>>, vector<1x1x16xf32>
    %64 = vector.shape_cast %63 : vector<1x1x16xf32> to vector<1x16xf32>
    %65 = vector.shape_cast %62 : vector<1x16xf32> to vector<1x1x16xf32>
    tpu.vector_store %arg7[%c1_40, %c8_41, %c0_42], %65 {strides = array<i32>} : memref<2x22x128xf32, #tpu.memory_space<vmem>>, vector<1x1x16xf32>,
    %66 = vector.extract_strided_slice %15 {offsets = [0, 96], sizes = [1, 16], strides = [1, 1]} : vector<1x256xf32> to vector<1x16xf32>
    %c0_43 = arith.constant 0 : index
    %c9 = arith.constant 9 : index
    %c0_44 = arith.constant 0 : index
    %67 = vector.load %arg7[%c0_43, %c9, %c0_44] : memref<2x22x128xf32, #tpu.memory_space<vmem>>, vector<1x1x16xf32>
    %68 = vector.shape_cast %67 : vector<1x1x16xf32> to vector<1x16xf32>
    %69 = vector.shape_cast %66 : vector<1x16xf32> to vector<1x1x16xf32>
    tpu.vector_store %arg7[%c0_43, %c9, %c0_44], %69 {strides = array<i32>} : memref<2x22x128xf32, #tpu.memory_space<vmem>>, vector<1x1x16xf32>,
    %70 = vector.extract_strided_slice %13 {offsets = [0, 96], sizes = [1, 16], strides = [1, 1]} : vector<1x256xf32> to vector<1x16xf32>
    %c1_45 = arith.constant 1 : index
    %c9_46 = arith.constant 9 : index
    %c0_47 = arith.constant 0 : index
    %71 = vector.load %arg7[%c1_45, %c9_46, %c0_47] : memref<2x22x128xf32, #tpu.memory_space<vmem>>, vector<1x1x16xf32>
    %72 = vector.shape_cast %71 : vector<1x1x16xf32> to vector<1x16xf32>
    %73 = vector.shape_cast %70 : vector<1x16xf32> to vector<1x1x16xf32>
    tpu.vector_store %arg7[%c1_45, %c9_46, %c0_47], %73 {strides = array<i32>} : memref<2x22x128xf32, #tpu.memory_space<vmem>>, vector<1x1x16xf32>,
    %74 = vector.extract_strided_slice %15 {offsets = [0, 112], sizes = [1, 16], strides = [1, 1]} : vector<1x256xf32> to vector<1x16xf32>
    %c0_48 = arith.constant 0 : index
    %c10 = arith.constant 10 : index
    %c0_49 = arith.constant 0 : index
    %75 = vector.load %arg7[%c0_48, %c10, %c0_49] : memref<2x22x128xf32, #tpu.memory_space<vmem>>, vector<1x1x16xf32>
    %76 = vector.shape_cast %75 : vector<1x1x16xf32> to vector<1x16xf32>
    %77 = vector.shape_cast %74 : vector<1x16xf32> to vector<1x1x16xf32>
    tpu.vector_store %arg7[%c0_48, %c10, %c0_49], %77 {strides = array<i32>} : memref<2x22x128xf32, #tpu.memory_space<vmem>>, vector<1x1x16xf32>,
    %78 = vector.extract_strided_slice %13 {offsets = [0, 112], sizes = [1, 16], strides = [1, 1]} : vector<1x256xf32> to vector<1x16xf32>
    %c1_50 = arith.constant 1 : index
    %c10_51 = arith.constant 10 : index
    %c0_52 = arith.constant 0 : index
    %79 = vector.load %arg7[%c1_50, %c10_51, %c0_52] : memref<2x22x128xf32, #tpu.memory_space<vmem>>, vector<1x1x16xf32>
    %80 = vector.shape_cast %79 : vector<1x1x16xf32> to vector<1x16xf32>
    %81 = vector.shape_cast %78 : vector<1x16xf32> to vector<1x1x16xf32>
    tpu.vector_store %arg7[%c1_50, %c10_51, %c0_52], %81 {strides = array<i32>} : memref<2x22x128xf32, #tpu.memory_space<vmem>>, vector<1x1x16xf32>,
    %82 = vector.extract_strided_slice %15 {offsets = [0, 128], sizes = [1, 16], strides = [1, 1]} : vector<1x256xf32> to vector<1x16xf32>
    %c0_53 = arith.constant 0 : index
    %c11 = arith.constant 11 : index
    %c0_54 = arith.constant 0 : index
    %83 = vector.load %arg7[%c0_53, %c11, %c0_54] : memref<2x22x128xf32, #tpu.memory_space<vmem>>, vector<1x1x16xf32>
    %84 = vector.shape_cast %83 : vector<1x1x16xf32> to vector<1x16xf32>
    %85 = vector.shape_cast %82 : vector<1x16xf32> to vector<1x1x16xf32>
    tpu.vector_store %arg7[%c0_53, %c11, %c0_54], %85 {strides = array<i32>} : memref<2x22x128xf32, #tpu.memory_space<vmem>>, vector<1x1x16xf32>,
    %86 = vector.extract_strided_slice %13 {offsets = [0, 128], sizes = [1, 16], strides = [1, 1]} : vector<1x256xf32> to vector<1x16xf32>
    %c1_55 = arith.constant 1 : index
    %c11_56 = arith.constant 11 : index
    %c0_57 = arith.constant 0 : index
    %87 = vector.load %arg7[%c1_55, %c11_56, %c0_57] : memref<2x22x128xf32, #tpu.memory_space<vmem>>, vector<1x1x16xf32>
    %88 = vector.shape_cast %87 : vector<1x1x16xf32> to vector<1x16xf32>
    %89 = vector.shape_cast %86 : vector<1x16xf32> to vector<1x1x16xf32>
    tpu.vector_store %arg7[%c1_55, %c11_56, %c0_57], %89 {strides = array<i32>} : memref<2x22x128xf32, #tpu.memory_space<vmem>>, vector<1x1x16xf32>,
    %90 = vector.extract_strided_slice %15 {offsets = [0, 144], sizes = [1, 16], strides = [1, 1]} : vector<1x256xf32> to vector<1x16xf32>
    %c0_58 = arith.constant 0 : index
    %c12 = arith.constant 12 : index
    %c0_59 = arith.constant 0 : index
    %91 = vector.load %arg7[%c0_58, %c12, %c0_59] : memref<2x22x128xf32, #tpu.memory_space<vmem>>, vector<1x1x16xf32>
    %92 = vector.shape_cast %91 : vector<1x1x16xf32> to vector<1x16xf32>
    %93 = vector.shape_cast %90 : vector<1x16xf32> to vector<1x1x16xf32>
    tpu.vector_store %arg7[%c0_58, %c12, %c0_59], %93 {strides = array<i32>} : memref<2x22x128xf32, #tpu.memory_space<vmem>>, vector<1x1x16xf32>,
    %94 = vector.extract_strided_slice %13 {offsets = [0, 144], sizes = [1, 16], strides = [1, 1]} : vector<1x256xf32> to vector<1x16xf32>
    %c1_60 = arith.constant 1 : index
    %c12_61 = arith.constant 12 : index
    %c0_62 = arith.constant 0 : index
    %95 = vector.load %arg7[%c1_60, %c12_61, %c0_62] : memref<2x22x128xf32, #tpu.memory_space<vmem>>, vector<1x1x16xf32>
    %96 = vector.shape_cast %95 : vector<1x1x16xf32> to vector<1x16xf32>
    %97 = vector.shape_cast %94 : vector<1x16xf32> to vector<1x1x16xf32>
    tpu.vector_store %arg7[%c1_60, %c12_61, %c0_62], %97 {strides = array<i32>} : memref<2x22x128xf32, #tpu.memory_space<vmem>>, vector<1x1x16xf32>,
    %98 = vector.extract_strided_slice %15 {offsets = [0, 160], sizes = [1, 16], strides = [1, 1]} : vector<1x256xf32> to vector<1x16xf32>
    %c0_63 = arith.constant 0 : index
    %c13 = arith.constant 13 : index
    %c0_64 = arith.constant 0 : index
    %99 = vector.load %arg7[%c0_63, %c13, %c0_64] : memref<2x22x128xf32, #tpu.memory_space<vmem>>, vector<1x1x16xf32>
    %100 = vector.shape_cast %99 : vector<1x1x16xf32> to vector<1x16xf32>
    %101 = vector.shape_cast %98 : vector<1x16xf32> to vector<1x1x16xf32>
    tpu.vector_store %arg7[%c0_63, %c13, %c0_64], %101 {strides = array<i32>} : memref<2x22x128xf32, #tpu.memory_space<vmem>>, vector<1x1x16xf32>,
    %102 = vector.extract_strided_slice %13 {offsets = [0, 160], sizes = [1, 16], strides = [1, 1]} : vector<1x256xf32> to vector<1x16xf32>
    %c1_65 = arith.constant 1 : index
    %c13_66 = arith.constant 13 : index
    %c0_67 = arith.constant 0 : index
    %103 = vector.load %arg7[%c1_65, %c13_66, %c0_67] : memref<2x22x128xf32, #tpu.memory_space<vmem>>, vector<1x1x16xf32>
    %104 = vector.shape_cast %103 : vector<1x1x16xf32> to vector<1x16xf32>
    %105 = vector.shape_cast %102 : vector<1x16xf32> to vector<1x1x16xf32>
    tpu.vector_store %arg7[%c1_65, %c13_66, %c0_67], %105 {strides = array<i32>} : memref<2x22x128xf32, #tpu.memory_space<vmem>>, vector<1x1x16xf32>,
    %106 = vector.extract_strided_slice %15 {offsets = [0, 176], sizes = [1, 16], strides = [1, 1]} : vector<1x256xf32> to vector<1x16xf32>
    %c0_68 = arith.constant 0 : index
    %c14 = arith.constant 14 : index
    %c0_69 = arith.constant 0 : index
    %107 = vector.load %arg7[%c0_68, %c14, %c0_69] : memref<2x22x128xf32, #tpu.memory_space<vmem>>, vector<1x1x16xf32>
    %108 = vector.shape_cast %107 : vector<1x1x16xf32> to vector<1x16xf32>
    %109 = vector.shape_cast %106 : vector<1x16xf32> to vector<1x1x16xf32>
    tpu.vector_store %arg7[%c0_68, %c14, %c0_69], %109 {strides = array<i32>} : memref<2x22x128xf32, #tpu.memory_space<vmem>>, vector<1x1x16xf32>,
    %110 = vector.extract_strided_slice %13 {offsets = [0, 176], sizes = [1, 16], strides = [1, 1]} : vector<1x256xf32> to vector<1x16xf32>
    %c1_70 = arith.constant 1 : index
    %c14_71 = arith.constant 14 : index
    %c0_72 = arith.constant 0 : index
    %111 = vector.load %arg7[%c1_70, %c14_71, %c0_72] : memref<2x22x128xf32, #tpu.memory_space<vmem>>, vector<1x1x16xf32>
    %112 = vector.shape_cast %111 : vector<1x1x16xf32> to vector<1x16xf32>
    %113 = vector.shape_cast %110 : vector<1x16xf32> to vector<1x1x16xf32>
    tpu.vector_store %arg7[%c1_70, %c14_71, %c0_72], %113 {strides = array<i32>} : memref<2x22x128xf32, #tpu.memory_space<vmem>>, vector<1x1x16xf32>,
    %114 = vector.extract_strided_slice %15 {offsets = [0, 192], sizes = [1, 16], strides = [1, 1]} : vector<1x256xf32> to vector<1x16xf32>
    %c0_73 = arith.constant 0 : index
    %c15 = arith.constant 15 : index
    %c0_74 = arith.constant 0 : index
    %115 = vector.load %arg7[%c0_73, %c15, %c0_74] : memref<2x22x128xf32, #tpu.memory_space<vmem>>, vector<1x1x16xf32>
    %116 = vector.shape_cast %115 : vector<1x1x16xf32> to vector<1x16xf32>
    %117 = vector.shape_cast %114 : vector<1x16xf32> to vector<1x1x16xf32>
    tpu.vector_store %arg7[%c0_73, %c15, %c0_74], %117 {strides = array<i32>} : memref<2x22x128xf32, #tpu.memory_space<vmem>>, vector<1x1x16xf32>,
    %118 = vector.extract_strided_slice %13 {offsets = [0, 192], sizes = [1, 16], strides = [1, 1]} : vector<1x256xf32> to vector<1x16xf32>
    %c1_75 = arith.constant 1 : index
    %c15_76 = arith.constant 15 : index
    %c0_77 = arith.constant 0 : index
    %119 = vector.load %arg7[%c1_75, %c15_76, %c0_77] : memref<2x22x128xf32, #tpu.memory_space<vmem>>, vector<1x1x16xf32>
    %120 = vector.shape_cast %119 : vector<1x1x16xf32> to vector<1x16xf32>
    %121 = vector.shape_cast %118 : vector<1x16xf32> to vector<1x1x16xf32>
    tpu.vector_store %arg7[%c1_75, %c15_76, %c0_77], %121 {strides = array<i32>} : memref<2x22x128xf32, #tpu.memory_space<vmem>>, vector<1x1x16xf32>,
    %122 = vector.extract_strided_slice %15 {offsets = [0, 208], sizes = [1, 16], strides = [1, 1]} : vector<1x256xf32> to vector<1x16xf32>
    %c0_78 = arith.constant 0 : index
    %c16 = arith.constant 16 : index
    %c0_79 = arith.constant 0 : index
    %123 = vector.load %arg7[%c0_78, %c16, %c0_79] : memref<2x22x128xf32, #tpu.memory_space<vmem>>, vector<1x1x16xf32>
    %124 = vector.shape_cast %123 : vector<1x1x16xf32> to vector<1x16xf32>
    %125 = vector.shape_cast %122 : vector<1x16xf32> to vector<1x1x16xf32>
    tpu.vector_store %arg7[%c0_78, %c16, %c0_79], %125 {strides = array<i32>} : memref<2x22x128xf32, #tpu.memory_space<vmem>>, vector<1x1x16xf32>,
    %126 = vector.extract_strided_slice %13 {offsets = [0, 208], sizes = [1, 16], strides = [1, 1]} : vector<1x256xf32> to vector<1x16xf32>
    %c1_80 = arith.constant 1 : index
    %c16_81 = arith.constant 16 : index
    %c0_82 = arith.constant 0 : index
    %127 = vector.load %arg7[%c1_80, %c16_81, %c0_82] : memref<2x22x128xf32, #tpu.memory_space<vmem>>, vector<1x1x16xf32>
    %128 = vector.shape_cast %127 : vector<1x1x16xf32> to vector<1x16xf32>
    %129 = vector.shape_cast %126 : vector<1x16xf32> to vector<1x1x16xf32>
    tpu.vector_store %arg7[%c1_80, %c16_81, %c0_82], %129 {strides = array<i32>} : memref<2x22x128xf32, #tpu.memory_space<vmem>>, vector<1x1x16xf32>,
    %130 = vector.extract_strided_slice %15 {offsets = [0, 224], sizes = [1, 16], strides = [1, 1]} : vector<1x256xf32> to vector<1x16xf32>
    %c0_83 = arith.constant 0 : index
    %c17 = arith.constant 17 : index
    %c0_84 = arith.constant 0 : index
    %131 = vector.load %arg7[%c0_83, %c17, %c0_84] : memref<2x22x128xf32, #tpu.memory_space<vmem>>, vector<1x1x16xf32>
    %132 = vector.shape_cast %131 : vector<1x1x16xf32> to vector<1x16xf32>
    %133 = vector.shape_cast %130 : vector<1x16xf32> to vector<1x1x16xf32>
    tpu.vector_store %arg7[%c0_83, %c17, %c0_84], %133 {strides = array<i32>} : memref<2x22x128xf32, #tpu.memory_space<vmem>>, vector<1x1x16xf32>,
    %134 = vector.extract_strided_slice %13 {offsets = [0, 224], sizes = [1, 16], strides = [1, 1]} : vector<1x256xf32> to vector<1x16xf32>
    %c1_85 = arith.constant 1 : index
    %c17_86 = arith.constant 17 : index
    %c0_87 = arith.constant 0 : index
    %135 = vector.load %arg7[%c1_85, %c17_86, %c0_87] : memref<2x22x128xf32, #tpu.memory_space<vmem>>, vector<1x1x16xf32>
    %136 = vector.shape_cast %135 : vector<1x1x16xf32> to vector<1x16xf32>
    %137 = vector.shape_cast %134 : vector<1x16xf32> to vector<1x1x16xf32>
    tpu.vector_store %arg7[%c1_85, %c17_86, %c0_87], %137 {strides = array<i32>} : memref<2x22x128xf32, #tpu.memory_space<vmem>>, vector<1x1x16xf32>,
    %138 = vector.extract_strided_slice %15 {offsets = [0, 240], sizes = [1, 16], strides = [1, 1]} : vector<1x256xf32> to vector<1x16xf32>
    %c0_88 = arith.constant 0 : index
    %c18 = arith.constant 18 : index
    %c0_89 = arith.constant 0 : index
    %139 = vector.load %arg7[%c0_88, %c18, %c0_89] : memref<2x22x128xf32, #tpu.memory_space<vmem>>, vector<1x1x16xf32>
    %140 = vector.shape_cast %139 : vector<1x1x16xf32> to vector<1x16xf32>
    %141 = vector.shape_cast %138 : vector<1x16xf32> to vector<1x1x16xf32>
    tpu.vector_store %arg7[%c0_88, %c18, %c0_89], %141 {strides = array<i32>} : memref<2x22x128xf32, #tpu.memory_space<vmem>>, vector<1x1x16xf32>,
    %142 = vector.extract_strided_slice %13 {offsets = [0, 240], sizes = [1, 16], strides = [1, 1]} : vector<1x256xf32> to vector<1x16xf32>
    %c1_90 = arith.constant 1 : index
    %c18_91 = arith.constant 18 : index
    %c0_92 = arith.constant 0 : index
    %143 = vector.load %arg7[%c1_90, %c18_91, %c0_92] : memref<2x22x128xf32, #tpu.memory_space<vmem>>, vector<1x1x16xf32>
    %144 = vector.shape_cast %143 : vector<1x1x16xf32> to vector<1x16xf32>
    %145 = vector.shape_cast %142 : vector<1x16xf32> to vector<1x1x16xf32>
    tpu.vector_store %arg7[%c1_90, %c18_91, %c0_92], %145 {strides = array<i32>} : memref<2x22x128xf32, #tpu.memory_space<vmem>>, vector<1x1x16xf32>,
    %cst_93 = arith.constant 0.000000e+00 : f32
    %146 = vector.broadcast %cst_93 : f32 to vector<16x128xf32>
    %c0_94 = arith.constant 0 : index
    %c0_95 = arith.constant 0 : index
    %c0_96 = arith.constant 0 : index
    %147 = vector.load %arg7[%c0_94, %c0_95, %c0_96] : memref<2x22x128xf32, #tpu.memory_space<vmem>>, vector<1x16x128xf32>
    %148 = vector.shape_cast %147 : vector<1x16x128xf32> to vector<16x128xf32>
    %c0_97 = arith.constant 0 : index
    %c0_98 = arith.constant 0 : index
    %c0_99 = arith.constant 0 : index
    %149 = vector.load %arg2[%c0_97, %c0_98, %c0_99] : memref<14x128x128xf32, #tpu.memory_space<vmem>>, vector<1x128x128xf32>
    %150 = vector.shape_cast %149 : vector<1x128x128xf32> to vector<128x128xf32>
    %cst_100 = arith.constant dense<0.000000e+00> : vector<16x128xf32>
    %151 = tpu.matmul %148, %150, %cst_100 {dimension_numbers = #tpu.dot_dimension_numbers<[1], [0], [0], [1], [0, 0, 1, 1], [], []>} : vector<16x128xf32>, vector<128x128xf32>, vector<16x128xf32> -> vector<16x128xf32>
    %152 = arith.addf %146, %151 : vector<16x128xf32>
    %c0_101 = arith.constant 0 : index
    %c1_102 = arith.constant 1 : index
    %c0_103 = arith.constant 0 : index
    %153 = vector.load %arg7[%c0_101, %c1_102, %c0_103] : memref<2x22x128xf32, #tpu.memory_space<vmem>>, vector<1x16x128xf32>
    %154 = vector.shape_cast %153 : vector<1x16x128xf32> to vector<16x128xf32>
    %c1_104 = arith.constant 1 : index
    %c0_105 = arith.constant 0 : index
    %c0_106 = arith.constant 0 : index
    %155 = vector.load %arg2[%c1_104, %c0_105, %c0_106] : memref<14x128x128xf32, #tpu.memory_space<vmem>>, vector<1x128x128xf32>
    %156 = vector.shape_cast %155 : vector<1x128x128xf32> to vector<128x128xf32>
    %cst_107 = arith.constant dense<0.000000e+00> : vector<16x128xf32>
    %157 = tpu.matmul %154, %156, %cst_107 {dimension_numbers = #tpu.dot_dimension_numbers<[1], [0], [0], [1], [0, 0, 1, 1], [], []>} : vector<16x128xf32>, vector<128x128xf32>, vector<16x128xf32> -> vector<16x128xf32>
    %158 = arith.addf %152, %157 : vector<16x128xf32>
    %c0_108 = arith.constant 0 : index
    %c2_109 = arith.constant 2 : index
    %c0_110 = arith.constant 0 : index
    %159 = vector.load %arg7[%c0_108, %c2_109, %c0_110] : memref<2x22x128xf32, #tpu.memory_space<vmem>>, vector<1x16x128xf32>
    %160 = vector.shape_cast %159 : vector<1x16x128xf32> to vector<16x128xf32>
    %c2_111 = arith.constant 2 : index
    %c0_112 = arith.constant 0 : index
    %c0_113 = arith.constant 0 : index
    %161 = vector.load %arg2[%c2_111, %c0_112, %c0_113] : memref<14x128x128xf32, #tpu.memory_space<vmem>>, vector<1x128x128xf32>
    %162 = vector.shape_cast %161 : vector<1x128x128xf32> to vector<128x128xf32>
    %cst_114 = arith.constant dense<0.000000e+00> : vector<16x128xf32>
    %163 = tpu.matmul %160, %162, %cst_114 {dimension_numbers = #tpu.dot_dimension_numbers<[1], [0], [0], [1], [0, 0, 1, 1], [], []>} : vector<16x128xf32>, vector<128x128xf32>, vector<16x128xf32> -> vector<16x128xf32>
    %164 = arith.addf %158, %163 : vector<16x128xf32>
    %c0_115 = arith.constant 0 : index
    %c3_116 = arith.constant 3 : index
    %c0_117 = arith.constant 0 : index
    %165 = vector.load %arg7[%c0_115, %c3_116, %c0_117] : memref<2x22x128xf32, #tpu.memory_space<vmem>>, vector<1x16x128xf32>
    %166 = vector.shape_cast %165 : vector<1x16x128xf32> to vector<16x128xf32>
    %c3_118 = arith.constant 3 : index
    %c0_119 = arith.constant 0 : index
    %c0_120 = arith.constant 0 : index
    %167 = vector.load %arg2[%c3_118, %c0_119, %c0_120] : memref<14x128x128xf32, #tpu.memory_space<vmem>>, vector<1x128x128xf32>
    %168 = vector.shape_cast %167 : vector<1x128x128xf32> to vector<128x128xf32>
    %cst_121 = arith.constant dense<0.000000e+00> : vector<16x128xf32>
    %169 = tpu.matmul %166, %168, %cst_121 {dimension_numbers = #tpu.dot_dimension_numbers<[1], [0], [0], [1], [0, 0, 1, 1], [], []>} : vector<16x128xf32>, vector<128x128xf32>, vector<16x128xf32> -> vector<16x128xf32>
    %170 = arith.addf %164, %169 : vector<16x128xf32>
    %c0_122 = arith.constant 0 : index
    %c4_123 = arith.constant 4 : index
    %c0_124 = arith.constant 0 : index
    %171 = vector.load %arg7[%c0_122, %c4_123, %c0_124] : memref<2x22x128xf32, #tpu.memory_space<vmem>>, vector<1x16x128xf32>
    %172 = vector.shape_cast %171 : vector<1x16x128xf32> to vector<16x128xf32>
    %c4_125 = arith.constant 4 : index
    %c0_126 = arith.constant 0 : index
    %c0_127 = arith.constant 0 : index
    %173 = vector.load %arg2[%c4_125, %c0_126, %c0_127] : memref<14x128x128xf32, #tpu.memory_space<vmem>>, vector<1x128x128xf32>
    %174 = vector.shape_cast %173 : vector<1x128x128xf32> to vector<128x128xf32>
    %cst_128 = arith.constant dense<0.000000e+00> : vector<16x128xf32>
    %175 = tpu.matmul %172, %174, %cst_128 {dimension_numbers = #tpu.dot_dimension_numbers<[1], [0], [0], [1], [0, 0, 1, 1], [], []>} : vector<16x128xf32>, vector<128x128xf32>, vector<16x128xf32> -> vector<16x128xf32>
    %176 = arith.addf %170, %175 : vector<16x128xf32>
    %c0_129 = arith.constant 0 : index
    %c5_130 = arith.constant 5 : index
    %c0_131 = arith.constant 0 : index
    %177 = vector.load %arg7[%c0_129, %c5_130, %c0_131] : memref<2x22x128xf32, #tpu.memory_space<vmem>>, vector<1x16x128xf32>
    %178 = vector.shape_cast %177 : vector<1x16x128xf32> to vector<16x128xf32>
    %c5_132 = arith.constant 5 : index
    %c0_133 = arith.constant 0 : index
    %c0_134 = arith.constant 0 : index
    %179 = vector.load %arg2[%c5_132, %c0_133, %c0_134] : memref<14x128x128xf32, #tpu.memory_space<vmem>>, vector<1x128x128xf32>
    %180 = vector.shape_cast %179 : vector<1x128x128xf32> to vector<128x128xf32>
    %cst_135 = arith.constant dense<0.000000e+00> : vector<16x128xf32>
    %181 = tpu.matmul %178, %180, %cst_135 {dimension_numbers = #tpu.dot_dimension_numbers<[1], [0], [0], [1], [0, 0, 1, 1], [], []>} : vector<16x128xf32>, vector<128x128xf32>, vector<16x128xf32> -> vector<16x128xf32>
    %182 = arith.addf %176, %181 : vector<16x128xf32>
    %c0_136 = arith.constant 0 : index
    %c6_137 = arith.constant 6 : index
    %c0_138 = arith.constant 0 : index
    %183 = vector.load %arg7[%c0_136, %c6_137, %c0_138] : memref<2x22x128xf32, #tpu.memory_space<vmem>>, vector<1x16x128xf32>
    %184 = vector.shape_cast %183 : vector<1x16x128xf32> to vector<16x128xf32>
    %c6_139 = arith.constant 6 : index
    %c0_140 = arith.constant 0 : index
    %c0_141 = arith.constant 0 : index
    %185 = vector.load %arg2[%c6_139, %c0_140, %c0_141] : memref<14x128x128xf32, #tpu.memory_space<vmem>>, vector<1x128x128xf32>
    %186 = vector.shape_cast %185 : vector<1x128x128xf32> to vector<128x128xf32>
    %cst_142 = arith.constant dense<0.000000e+00> : vector<16x128xf32>
    %187 = tpu.matmul %184, %186, %cst_142 {dimension_numbers = #tpu.dot_dimension_numbers<[1], [0], [0], [1], [0, 0, 1, 1], [], []>} : vector<16x128xf32>, vector<128x128xf32>, vector<16x128xf32> -> vector<16x128xf32>
    %188 = arith.addf %182, %187 : vector<16x128xf32>
    %c1_143 = arith.constant 1 : index
    %c0_144 = arith.constant 0 : index
    %c0_145 = arith.constant 0 : index
    %189 = vector.load %arg7[%c1_143, %c0_144, %c0_145] : memref<2x22x128xf32, #tpu.memory_space<vmem>>, vector<1x16x128xf32>
    %190 = vector.shape_cast %189 : vector<1x16x128xf32> to vector<16x128xf32>
    %c7_146 = arith.constant 7 : index
    %c0_147 = arith.constant 0 : index
    %c0_148 = arith.constant 0 : index
    %191 = vector.load %arg2[%c7_146, %c0_147, %c0_148] : memref<14x128x128xf32, #tpu.memory_space<vmem>>, vector<1x128x128xf32>
    %192 = vector.shape_cast %191 : vector<1x128x128xf32> to vector<128x128xf32>
    %cst_149 = arith.constant dense<0.000000e+00> : vector<16x128xf32>
    %193 = tpu.matmul %190, %192, %cst_149 {dimension_numbers = #tpu.dot_dimension_numbers<[1], [0], [0], [1], [0, 0, 1, 1], [], []>} : vector<16x128xf32>, vector<128x128xf32>, vector<16x128xf32> -> vector<16x128xf32>
    %194 = arith.addf %188, %193 : vector<16x128xf32>
    %c1_150 = arith.constant 1 : index
    %c1_151 = arith.constant 1 : index
    %c0_152 = arith.constant 0 : index
    %195 = vector.load %arg7[%c1_150, %c1_151, %c0_152] : memref<2x22x128xf32, #tpu.memory_space<vmem>>, vector<1x16x128xf32>
    %196 = vector.shape_cast %195 : vector<1x16x128xf32> to vector<16x128xf32>
    %c8_153 = arith.constant 8 : index
    %c0_154 = arith.constant 0 : index
    %c0_155 = arith.constant 0 : index
    %197 = vector.load %arg2[%c8_153, %c0_154, %c0_155] : memref<14x128x128xf32, #tpu.memory_space<vmem>>, vector<1x128x128xf32>
    %198 = vector.shape_cast %197 : vector<1x128x128xf32> to vector<128x128xf32>
    %cst_156 = arith.constant dense<0.000000e+00> : vector<16x128xf32>
    %199 = tpu.matmul %196, %198, %cst_156 {dimension_numbers = #tpu.dot_dimension_numbers<[1], [0], [0], [1], [0, 0, 1, 1], [], []>} : vector<16x128xf32>, vector<128x128xf32>, vector<16x128xf32> -> vector<16x128xf32>
    %200 = arith.addf %194, %199 : vector<16x128xf32>
    %c1_157 = arith.constant 1 : index
    %c2_158 = arith.constant 2 : index
    %c0_159 = arith.constant 0 : index
    %201 = vector.load %arg7[%c1_157, %c2_158, %c0_159] : memref<2x22x128xf32, #tpu.memory_space<vmem>>, vector<1x16x128xf32>
    %202 = vector.shape_cast %201 : vector<1x16x128xf32> to vector<16x128xf32>
    %c9_160 = arith.constant 9 : index
    %c0_161 = arith.constant 0 : index
    %c0_162 = arith.constant 0 : index
    %203 = vector.load %arg2[%c9_160, %c0_161, %c0_162] : memref<14x128x128xf32, #tpu.memory_space<vmem>>, vector<1x128x128xf32>
    %204 = vector.shape_cast %203 : vector<1x128x128xf32> to vector<128x128xf32>
    %cst_163 = arith.constant dense<0.000000e+00> : vector<16x128xf32>
    %205 = tpu.matmul %202, %204, %cst_163 {dimension_numbers = #tpu.dot_dimension_numbers<[1], [0], [0], [1], [0, 0, 1, 1], [], []>} : vector<16x128xf32>, vector<128x128xf32>, vector<16x128xf32> -> vector<16x128xf32>
    %206 = arith.addf %200, %205 : vector<16x128xf32>
    %c1_164 = arith.constant 1 : index
    %c3_165 = arith.constant 3 : index
    %c0_166 = arith.constant 0 : index
    %207 = vector.load %arg7[%c1_164, %c3_165, %c0_166] : memref<2x22x128xf32, #tpu.memory_space<vmem>>, vector<1x16x128xf32>
    %208 = vector.shape_cast %207 : vector<1x16x128xf32> to vector<16x128xf32>
    %c10_167 = arith.constant 10 : index
    %c0_168 = arith.constant 0 : index
    %c0_169 = arith.constant 0 : index
    %209 = vector.load %arg2[%c10_167, %c0_168, %c0_169] : memref<14x128x128xf32, #tpu.memory_space<vmem>>, vector<1x128x128xf32>
    %210 = vector.shape_cast %209 : vector<1x128x128xf32> to vector<128x128xf32>
    %cst_170 = arith.constant dense<0.000000e+00> : vector<16x128xf32>
    %211 = tpu.matmul %208, %210, %cst_170 {dimension_numbers = #tpu.dot_dimension_numbers<[1], [0], [0], [1], [0, 0, 1, 1], [], []>} : vector<16x128xf32>, vector<128x128xf32>, vector<16x128xf32> -> vector<16x128xf32>
    %212 = arith.addf %206, %211 : vector<16x128xf32>
    %c1_171 = arith.constant 1 : index
    %c4_172 = arith.constant 4 : index
    %c0_173 = arith.constant 0 : index
    %213 = vector.load %arg7[%c1_171, %c4_172, %c0_173] : memref<2x22x128xf32, #tpu.memory_space<vmem>>, vector<1x16x128xf32>
    %214 = vector.shape_cast %213 : vector<1x16x128xf32> to vector<16x128xf32>
    %c11_174 = arith.constant 11 : index
    %c0_175 = arith.constant 0 : index
    %c0_176 = arith.constant 0 : index
    %215 = vector.load %arg2[%c11_174, %c0_175, %c0_176] : memref<14x128x128xf32, #tpu.memory_space<vmem>>, vector<1x128x128xf32>
    %216 = vector.shape_cast %215 : vector<1x128x128xf32> to vector<128x128xf32>
    %cst_177 = arith.constant dense<0.000000e+00> : vector<16x128xf32>
    %217 = tpu.matmul %214, %216, %cst_177 {dimension_numbers = #tpu.dot_dimension_numbers<[1], [0], [0], [1], [0, 0, 1, 1], [], []>} : vector<16x128xf32>, vector<128x128xf32>, vector<16x128xf32> -> vector<16x128xf32>
    %218 = arith.addf %212, %217 : vector<16x128xf32>
    %c1_178 = arith.constant 1 : index
    %c5_179 = arith.constant 5 : index
    %c0_180 = arith.constant 0 : index
    %219 = vector.load %arg7[%c1_178, %c5_179, %c0_180] : memref<2x22x128xf32, #tpu.memory_space<vmem>>, vector<1x16x128xf32>
    %220 = vector.shape_cast %219 : vector<1x16x128xf32> to vector<16x128xf32>
    %c12_181 = arith.constant 12 : index
    %c0_182 = arith.constant 0 : index
    %c0_183 = arith.constant 0 : index
    %221 = vector.load %arg2[%c12_181, %c0_182, %c0_183] : memref<14x128x128xf32, #tpu.memory_space<vmem>>, vector<1x128x128xf32>
    %222 = vector.shape_cast %221 : vector<1x128x128xf32> to vector<128x128xf32>
    %cst_184 = arith.constant dense<0.000000e+00> : vector<16x128xf32>
    %223 = tpu.matmul %220, %222, %cst_184 {dimension_numbers = #tpu.dot_dimension_numbers<[1], [0], [0], [1], [0, 0, 1, 1], [], []>} : vector<16x128xf32>, vector<128x128xf32>, vector<16x128xf32> -> vector<16x128xf32>
    %224 = arith.addf %218, %223 : vector<16x128xf32>
    %c1_185 = arith.constant 1 : index
    %c6_186 = arith.constant 6 : index
    %c0_187 = arith.constant 0 : index
    %225 = vector.load %arg7[%c1_185, %c6_186, %c0_187] : memref<2x22x128xf32, #tpu.memory_space<vmem>>, vector<1x16x128xf32>
    %226 = vector.shape_cast %225 : vector<1x16x128xf32> to vector<16x128xf32>
    %c13_188 = arith.constant 13 : index
    %c0_189 = arith.constant 0 : index
    %c0_190 = arith.constant 0 : index
    %227 = vector.load %arg2[%c13_188, %c0_189, %c0_190] : memref<14x128x128xf32, #tpu.memory_space<vmem>>, vector<1x128x128xf32>
    %228 = vector.shape_cast %227 : vector<1x128x128xf32> to vector<128x128xf32>
    %cst_191 = arith.constant dense<0.000000e+00> : vector<16x128xf32>
    %229 = tpu.matmul %226, %228, %cst_191 {dimension_numbers = #tpu.dot_dimension_numbers<[1], [0], [0], [1], [0, 0, 1, 1], [], []>} : vector<16x128xf32>, vector<128x128xf32>, vector<16x128xf32> -> vector<16x128xf32>
    %230 = arith.addf %224, %229 : vector<16x128xf32>
    %231 = arith.negf %230 : vector<16x128xf32>
    %232 = math.exp %231 : vector<16x128xf32>
    %cst_192 = arith.constant 1.000000e+00 : f32
    %233 = vector.broadcast %cst_192 : f32 to vector<16x128xf32>
    %234 = arith.addf %233, %232 : vector<16x128xf32>
    %235 = arith.divf %233, %234 : vector<16x128xf32>
    %236 = vector.shape_cast %235 : vector<16x128xf32> to vector<1x16x128xf32>
    %c0_193 = arith.constant 0 : index
    %c0_194 = arith.constant 0 : index
    %c0_195 = arith.constant 0 : index
    %237 = vector.load %arg4[%c0_193, %c0_194, %c0_195] : memref<1x16x128xf32, #tpu.memory_space<vmem>>, vector<1x16x128xf32>
    tpu.vector_store %arg4[%c0_193, %c0_194, %c0_195], %236 {strides = array<i32>} : memref<1x16x128xf32, #tpu.memory_space<vmem>>, vector<1x16x128xf32>,
    return
  }
  func.func @transform_0(%arg0: i32, %arg1: i32) -> (i32, i32, i32) {
    %c0_i32 = arith.constant 0 : i32
    %c0_i32_0 = arith.constant 0 : i32
    %c0_i32_1 = arith.constant 0 : i32
    %c0_i32_2 = arith.constant 0 : i32
    return %c0_i32, %c0_i32_0, %c0_i32_1 : i32, i32, i32
  }
  func.func @transform_1(%arg0: i32, %arg1: i32) -> (i32, i32, i32) {
    %c0_i32 = arith.constant 0 : i32
    %c0_i32_0 = arith.constant 0 : i32
    return %arg0, %arg1, %c0_i32 : i32, i32, i32
  }
  func.func @transform_2(%arg0: i32, %arg1: i32) -> (i32, i32, i32) {
    %c0_i32 = arith.constant 0 : i32
    %c0_i32_0 = arith.constant 0 : i32
    %c0_i32_1 = arith.constant 0 : i32
    return %arg0, %c0_i32, %c0_i32_0 : i32, i32, i32
  }
}

</mosaic_0001>

<bundles_post_ra>
// kernel: tpu_custom_call.1
= control target key start
LH: loop header
LB: loop body
LE: loop exit
PB: predicated region body
PF: predicated region fallthrough
CT: control target
= control target key end

     0   :  { %7 = vsyncpa [#allocation6], 0  ;;  %s3645_s0 = inlined_call_operand.hbm [shape: f32[14,128,128], index: 0, kind: input, shape index: {}]   ;;  %s3646_s1 = inlined_call_operand.hbm [shape: f32[2,4,256], index: 1, kind: input, shape index: {}]   ;;  %s3647_s2 = inlined_call_operand.hbm [shape: f32[2,16,128], index: 2, kind: output, shape index: {}]  }
   0x1   :  { %8 = vsyncpa [#allocation9], 0 }
   0x2   :  { %10 = vsyncpa [#allocation9 + $0x1], 0 }
   0x3   :  { %11 = vsyncpa [#allocation7], 0 }
   0x4   :  { %13 = vsyncpa [#allocation7 + $0x1], 0  ;;  %s3326_s9 = smov 0   ;;  %s3328_s10 = smov 0  }
   0x5   :  { %s3330_s11 = smov 0   ;;  %s3332_s12 = smov 0  }
   0x6   :  { %s3334_s13 = smov 0   ;;  %s3336_s14 = smov 0  }
   0x7 LB: > { %s1817_s15 = sadd.s32 4294967295, %s3294_s14   ;;  %s1818_s16 = sadd.s32 4294967294, %s3294_s14   ;;  %s3294_s14 = sphi %s3336_s14, %s19_s14   ;;  %s3290_s13 = sphi %s3334_s13, %s3671_s13   ;;  %s3286_s12 = sphi %s3332_s12, %s3670_s12   ;;  %s3282_s11 = sphi %s3330_s11, %s3669_s11   ;;  %s3278_s10 = sphi %s3328_s10, %s3668_s10   ;;  %s3274_s9 = sphi %s3326_s9, %s3667_s9  }
   0x8   : > { %p74_p0 = scmp.ne.s32.totalorder %s3278_s10, %s3274_s9  ;;  %p3360_p1 = scmp.eq.s32.totalorder %s1817_s15, 0 }
   0x9   : > { %p3364_p2 = scmp.eq.s32.totalorder %s1817_s15, 1  ;;  %p104_p3 = scmp.eq.s32.totalorder %s1818_s16, 1 }
   0xa   : > { %s3652_s17 = scalar_select %p3360_p1, 1, 0 }
   0xb   : > { %s3653_s18 = scalar_select %p3364_p2, 1, 0 }
   0xc   : > { %p3370_p4 = por %p3360_p1, %p74_p0  ;;  %p1819_p5 = scmp.ge.s32.totalorder %s3294_s14, 1 }
   0xd   : > { %p3375_p6 = por %p104_p3, %p74_p0  ;;  %p111_p7 = scmp.lt.s32.totalorder %s3294_s14, 3 }
   0xe   : > { %s3654_s19 = scalar_select %p3370_p4, 1, 0 }
   0xf   : > { %s3655_s20 = scalar_select %p3375_p6, 1, 0 }
  0x10   : > { %p3380_p8 = pnand %p1819_p5, %p111_p7  ;;  %s3296_s22 = smov [#allocation5]  }
  0x11   : > { %s123_s23 = sshll.u32 %s3296_s22, 4  ;;  %s31_s25 = sadd.s32 1, %s3290_s13  ;;  %s124_s23 = int_to_ptr.vmem [resolvable:$true] %s123_s23 }
  0x12   : > { %s3656_s21 = scalar_select %p3380_p8, 1, 0 }
  0x13   : > { %p3065_p9 = pneg %p3380_p8  ;;  %s3150_s28 = scalar_lea.hbm %s3645_s0, 28672 }
  0x14   : > { %p3151_p12 = scmp.ne.s32.totalorder %s3645_s0, %s3150_s28  ;;  %p3157_p5 = scmp.lt.u32.totalorder %s3150_s28, %s3645_s0 }
  0x15   : > { %p3389_p11 = pnand %p3065_p9, %p3360_p1 }
  0x17   : > { %p3152_p13 = pneg %p3389_p11 }
  0x19   : > { %p3153_p0 = pnand %p3152_p13, %p3151_p12 }
  0x1b   : > { %p3154_p3 = pneg %p3153_p0 }
  0x1d   : > { %p3159_p7 = pnand %p3157_p5, %p3154_p3 }
  0x1f   : > { %3162 = shalt.err (!%p3159_p7)
}
  0x20   : > { %s3163_s5 = scalar_lea.vmem %s124_s23, 28672  ;;  %p3171_p4 = scmp.lt.s32.totalorder %s124_s23, %s124_s23 }
  0x21   : > { %p3164_p9 = scmp.ne.s32.totalorder %s124_s23, %s3163_s5  ;;  %p3172_p1 = scmp.lt.s32.totalorder %s3163_s5, %s3163_s5 }
  0x23   : > { %p3166_p10 = pnand %p3164_p9, %p3152_p13  ;;  %p3173_p8 = por %p3172_p1, %p3171_p4 }
  0x25   : > { %p3167_p6 = pneg %p3166_p10 }
  0x27   : > { %p3174_p2 = pnand %p3173_p8, %p3167_p6 }
  0x29   : > { %3177 = shalt.err (!%p3174_p2)
}
  0x2a   : > { %s3297_s6 = smov 128   ;;  %s3298_s7 = smov 8  }
  0x2b   : > { %3068 = dma.hbm_to_vmem [thread:$0]  (!%p3389_p11), %s3645_s0, 28672, %s124_s23, [#allocation6], %s3297_s6, %s3297_s6, %s3298_s7  }
  0x2c   : > { %p33_p1 = scmp.ge.s32.totalorder %s31_s25, 2  ;;  %s61_s16 = sadd.s32 1, %s3282_s11 }
  0x2d   : > { %p68_p2 = scmp.ne.s32.totalorder %s3282_s11, %s3278_s10  ;;  %p69_p4 = scmp.eq.s32.totalorder %s3294_s14, 0 }
  0x2e   : > { %s3673_s25 = smov (%p33_p1, %s31_s25), 0  ;;  %p3659_p8 = scmp.ne.s32.totalorder %s3653_s18, 0 }
  0x2f   : > { %p3416_p6 = por %p69_p4, %p68_p2  ;;  %s56_s24 = ssub.s32 %s3290_s13, %s3673_s25 }
  0x30   : > { %p3422_p10 = por %p3659_p8, %p68_p2  ;;  %p3078_p12 = scmp.lt.s32.totalorder %s3294_s14, 2 }
  0x31   : > { %p59_p11 = scmp.eq.s32.totalorder %s56_s24, 0  ;;  %s137_s23 = sand.u32 1, %s3282_s11  }
  0x32   : > { %s1822_s27 = sshll.u32 %s137_s23, 3  ;;  %s1839_s29 = sshll.u32 %s3290_s13, 7 }
  0x33   : > { %s3431_s28 = scalar_select %p59_p11, %s3282_s11, %s61_s16  }
  0x34   : > { %s3437_s4 = scalar_lea.hbm %s3646_s1, %s1839_s29  ;;  %s141_s18 = scalar_lea.vmem [#allocation8], %s1822_s27 }
  0x35   : > { %s151_s5 = sshll.u32 %s141_s18, 4  ;;  %p3443_p13 = pnand %p3078_p12, %p3416_p6  ;;  %s3439_s5 = int_to_ptr.vmem [resolvable:$true] %s151_s5 }
  0x36   : > { %s138_s7 = scalar_lea.sflag [#allocation9], %s137_s23  ;;  %s3178_s8 = scalar_lea.hbm %s3437_s4, 128 }
  0x37   : > { %p3179_p0 = scmp.ne.s32.totalorder %s3437_s4, %s3178_s8  ;;  %p3180_p3 = pneg %p3443_p13 }
  0x38   : > { %s3183_s24 = scalar_lea.hbm %s3646_s1, 256  ;;  %p3184_p9 = scmp.lt.u32.totalorder %s3437_s4, %s3646_s1 }
  0x39   : > { %p3181_p5 = pnand %p3180_p3, %p3179_p0  ;;  %p3185_p1 = scmp.lt.u32.totalorder %s3183_s24, %s3178_s8 }
  0x3a   : > { %p3187_p4 = scmp.lt.u32.totalorder %s3178_s8, %s3437_s4 }
  0x3b   : > { %p3182_p7 = pneg %p3181_p5  ;;  %p3186_p2 = por %p3185_p1, %p3184_p9 }
  0x3d   : > { %p3188_p6 = por %p3187_p4, %p3186_p2 }
  0x3f   : > { %p3189_p8 = pnand %p3188_p6, %p3182_p7 }
  0x41   : > { %3192 = shalt.err (!%p3189_p8)
}
  0x42   : > { %s3193_s23 = scalar_lea.vmem %s3439_s5, 128  ;;  %s3299_s29 = smov [#allocation8]  }
  0x43   : > { %p3194_p12 = scmp.ne.s32.totalorder %s3439_s5, %s3193_s23  ;;  %s3198_s30 = sshll.u32 %s3299_s29, 4  ;;  %s3199_s30 = int_to_ptr.vmem [resolvable:$false] %s3198_s30 }
  0x44   : > { %s3200_s3 = scalar_lea.vmem %s3199_s30, 256  ;;  %p3201_p5 = scmp.lt.s32.totalorder %s3439_s5, %s3199_s30 }
  0x45   : > { %p3196_p11 = pnand %p3194_p12, %p3180_p3  ;;  %p3202_p9 = scmp.lt.s32.totalorder %s3200_s3, %s3193_s23 }
  0x47   : > { %p3197_p0 = pneg %p3196_p11  ;;  %p3203_p1 = por %p3202_p9, %p3201_p5 }
  0x49   : > { %p3204_p2 = pnand %p3203_p1, %p3197_p0 }
  0x4b   : > { %3207 = shalt.err (!%p3204_p2)
}
  0x4c   : > { %3072 = dma.hbm_to_vmem [thread:$0]  (!%p3443_p13), %s3437_s4, 128, %s3439_s5, %s138_s7  }
  0x4d   : > { %p3662_p7 = scmp.ne.s32.totalorder %s3656_s21, 0 }
  0x4e   : > { %p3663_p3 = scmp.ne.s32.totalorder (!%p3662_p7), %s3652_s17, 0 }
  0x4f   : > { %160 = sbr.rel (%p3662_p7) target bundleno = 715 (0x2cb), region = 28 }
  0x56   : > { %3261 = dma.done.wait (%p3663_p3), [#allocation6], 28672  }
  0x57   : > { %3263 = vsyncadd (%p3663_p3), [#allocation6], 4294938624  ;;  %s3479_s18 = sand.u32 1, %s3278_s10   ;;  %p3664_p4 = scmp.ne.s32.totalorder %s3654_s19, 0 }
  0x58   : > { %s1827_s8 = sshll.u32 %s3479_s18, 3  ;;  %s167_s6 = scalar_lea.sflag [#allocation9], %s3479_s18 }
  0x59   : > { %s170_s15 = scalar_lea.vmem [#allocation8], %s1827_s8 }
  0x5a   : > { %3265 = dma.done.wait (%p3664_p4), %s167_s6, 128  }
  0x5b   : > { %3267 = vsyncadd (%p3664_p4), %s167_s6, 4294967168  ;;  %v3300_v0 = vmov 0.0   ;;  %v191_v1 = vld [vmem:[%s170_s15] ss:$4 sm:$0x3]  ;;  %vm211_vm0 = vcmask 122880   ;;  %v216_v14 = vlaneseq }
  0x5c   : > { %209 = vst [vmem:[#allocation4 + $0x20] sm:$0xff] %v3300_v0  ;;  %205 = vst [vmem:[#allocation4] sm:$0xff] %v3300_v0  ;;  %v1829_v2 = vld [vmem:[%s170_s15 + $0x1] ss:$4 sm:$0x3]  ;;  %s3301_s17 = smov 96  }
  0x5d   : > { %206 = vst [vmem:[#allocation4 + $0x8] sm:$0xff] %v3300_v0  ;;  %207 = vst [vmem:[#allocation4 + $0x10] sm:$0x3f] %v3300_v0  ;;  %v195_v3 = vmax.f32 %v191_v1, %v1829_v2  ;;  %v1830_v4 = vld [vmem:[%s170_s15 + $0x2] ss:$4 sm:$0x3]  ;;  %v194_v5 = vadd.f32 %v1829_v2, %v191_v1 }
  0x5e   : > { %208 = vst [vmem:[#allocation4 + $0x18] sm:$0xff] %v3300_v0  ;;  %210 = vst [vmem:[#allocation4 + $0x28] sm:$0x3f] %v3300_v0  ;;  %v1831_v6 = vld [vmem:[%s170_s15 + $0x3] ss:$4 sm:$0x3] }
  0x5f   : > { %v199_v7 = vmax.f32 %v195_v3, %v1830_v4  ;;  %v198_v8 = vadd.f32 %v1830_v4, %v194_v5  ;;  %v378_v11 = vld [vmem:[#allocation5 + $0x80] sm:$0xff]  ;;  %v379_v12 = vld [vmem:[#allocation5 + $0x88] sm:$0xff]  ;;  %s3302_s19 = smov 112   ;;  %v380_v16 = vld [vmem:[#allocation5 + $0x90] sm:$0xff]  ;;  %s3303_s21 = smov 80   ;;  %v217_v19 = vshrl.u32 %v216_v14, 7 }
  0x60   : > { %v2583_v15 = vpack.c.bf16 %v379_v12, %v378_v11  ;;  %v381_v17 = vld [vmem:[#allocation5 + $0x98] sm:$0xff]  ;;  %v1027_v18 = vld [vmem:[#allocation5 + $0x380] sm:$0xff]  ;;  %v1028_v21 = vld [vmem:[#allocation5 + $0x388] sm:$0xff]  ;;  %s3304_s4 = smov 64   ;;  %s3305_s5 = smov 48  }
  0x61   : > { %v3487_v9 = vmax.f32 %v199_v7, %v1831_v6  ;;  %v202_v10 = vadd.f32 %v1831_v6, %v198_v8  ;;  %v2587_v20 = vpack.c.bf16 %v381_v17, %v380_v16  ;;  %v2807_v22 = vpack.c.bf16 %v1028_v21, %v1027_v18  ;;  %v382_v23 = vld [vmem:[#allocation5 + $0xa0] sm:$0xff]  ;;  %v383_v24 = vld [vmem:[#allocation5 + $0xa8] sm:$0xff]  ;;  %v1029_v25 = vld [vmem:[#allocation5 + $0x390] sm:$0xff]  ;;  %s3306_s7 = smov 32   ;;  %s3307_s16 = smov 16  }
  0x62   : > { %2584 = vmatprep.subr.bf16.mxu1 %v2583_v15  ;;  %v218_v26 = vsub.s32 0, %v217_v19  ;;  %v2591_v27 = vpack.c.bf16 %v383_v24, %v382_v23  ;;  %v1030_v28 = vld [vmem:[#allocation5 + $0x398] sm:$0xff]  ;;  %v384_v30 = vld [vmem:[#allocation5 + $0xb0] sm:$0xff]  ;;  %v1031_v32 = vld [vmem:[#allocation5 + $0x3a0] sm:$0xff]  ;;  %s1828_s24 = sshll.u32 %s3479_s18, 4  ;;  %s1840_s22 = sshll.u32 %s3286_s12, 8 }
  0x63   : > { %302 = vrot.lane.b32.xlu1 %v3487_v9, %s3301_s17  ;;  %292 = vrot.lane.b32.xlu0 %v3487_v9, %s3302_s19  ;;  %v3493_v13 = vmul.f32 0.25, %v202_v10  ;;  %214 = vst.msk [vmem:[#allocation4 + $0x1b] sm:$0x1] %vm211_vm0, %v3487_v9  ;;  %v2811_v29 = vpack.c.bf16 %v1030_v28, %v1029_v25  ;;  %v385_v31 = vld [vmem:[#allocation5 + $0xb8] sm:$0xff]  ;;  %v1032_v35 = vld [vmem:[#allocation5 + $0x3a8] sm:$0xff]  ;;  %v386_v37 = vld [vmem:[#allocation5 + $0xc0] sm:$0xff]  ;;  %s3594_s3 = scalar_lea.hbm %s3647_s2, %s1840_s22 }
  0x64   : > { %2586 = vmatpush3.bf16.msra.mxu1 %v2583_v15  ;;  %2808 = vmatprep.subr.bf16.mxu0 %v2807_v22  ;;  %v2595_v34 = vpack.c.bf16 %v385_v31, %v384_v30  ;;  %v2815_v36 = vpack.c.bf16 %v1032_v35, %v1031_v32  ;;  %v387_v38 = vld [vmem:[#allocation5 + $0xc8] sm:$0xff]  ;;  %v1033_v39 = vld [vmem:[#allocation5 + $0x3b0] sm:$0xff]  ;;  %v3519_v40 = vrot.slane %v3487_v9, %v218_v26  ;;  %v1034_v42 = vld [vmem:[#allocation5 + $0x3b8] sm:$0xff]  ;;  %v284_v63 = vrot.slane %v3487_v9, 1  ;;  %s190_s27 = scalar_lea.vmem [#allocation10], %s1828_s24  ;;  %s1711_s8 = scalar_lea.sflag [#allocation7], %s3479_s18 }
  0x65   : > { %212 = vst.msk [vmem:[#allocation4 + $0x3] sm:$0x1] %vm211_vm0, %v3493_v13  ;;  %2588 = vmatprep.subr.bf16.mxu1 %v2587_v20  ;;  %2810 = vmatpush3.bf16.msra.mxu0 %v2807_v22  ;;  %v3512_v33 = vrot.slane %v3493_v13, %v218_v26  ;;  %v2599_v41 = vpack.c.bf16 %v387_v38, %v386_v37  ;;  %v388_v44 = vld [vmem:[#allocation5 + $0xd0] sm:$0xff]  ;;  %v389_v45 = vld [vmem:[#allocation5 + $0xd8] sm:$0xff]  ;;  %v1035_v46 = vld [vmem:[#allocation5 + $0x3c0] sm:$0xff]  ;;  %v281_v56 = vrot.slane %v3493_v13, 1 }
  0x66   : > { %2812 = vmatprep.subr.bf16.mxu0 %v2811_v29  ;;  %v2819_v43 = vpack.c.bf16 %v1034_v42, %v1033_v39  ;;  %v2603_v47 = vpack.c.bf16 %v389_v45, %v388_v44  ;;  %v1036_v48 = vld [vmem:[#allocation5 + $0x3c8] sm:$0xff]  ;;  %v390_v50 = vld [vmem:[#allocation5 + $0xe0] sm:$0xff]  ;;  %v1037_v52 = vld [vmem:[#allocation5 + $0x3d0] sm:$0xff]  ;;  %286 = vst.msk [vmem:[#allocation4 + $0x23] sm:$0x1] %vm211_vm0, %v284_v63  ;;  %s1724_s23 = sshll.u32 %s190_s27, 4  ;;  %s3596_s23 = int_to_ptr.vmem [resolvable:$true] %s1724_s23 }
  0x67   : > { %312 = vrot.lane.b32.xlu1 %v3487_v9, %s3303_s21  ;;  %287 = vrot.lane.b32.xlu0 %v3493_v13, %s3302_s19  ;;  %v2823_v49 = vpack.c.bf16 %v1036_v48, %v1035_v46  ;;  %v391_v51 = vld [vmem:[#allocation5 + $0xe8] sm:$0xff]  ;;  %v1038_v54 = vld [vmem:[#allocation5 + $0x3d8] sm:$0xff]  ;;  %v392_v57 = vld [vmem:[#allocation5 + $0xf0] sm:$0xff]  ;;  %283 = vst.msk [vmem:[#allocation4 + $0xb] sm:$0x1] %vm211_vm0, %v281_v56  ;;  %s3208_s6 = scalar_lea.vmem %s3596_s23, 256 }
  0x68   : > { %2590 = vmatpush3.bf16.msra.mxu1 %v2587_v20  ;;  %v2607_v53 = vpack.c.bf16 %v391_v51, %v390_v50  ;;  %v2827_v55 = vpack.c.bf16 %v1038_v54, %v1037_v52  ;;  %v393_v58 = vld [vmem:[#allocation5 + $0xf8] sm:$0xff]  ;;  %v1039_v59 = vld [vmem:[#allocation5 + $0x3e0] sm:$0xff]  ;;  %v1040_v61 = vld [vmem:[#allocation5 + $0x3e8] sm:$0xff]  ;;  %p3209_p13 = scmp.ne.s32.totalorder %s3596_s23, %s3208_s6  ;;  %s3308_s12 = smov [#allocation10]  }
  0x69   : > { %2592 = vmatprep.subr.bf16.mxu1 %v2591_v27  ;;  %2814 = vmatpush3.bf16.msra.mxu0 %v2811_v29  ;;  %v2611_v60 = vpack.c.bf16 %v393_v58, %v392_v57  ;;  %v2831_v62 = vpack.c.bf16 %v1040_v61, %v1039_v59  ;;  %v359_v0 = vld [vmem:[#allocation5] sm:$0xff]  ;;  %v360_v1 = vld [vmem:[#allocation5 + $0x8] sm:$0xff]  ;;  %v1041_v2 = vld [vmem:[#allocation5 + $0x3f0] sm:$0xff]  ;;  %s3212_s15 = sshll.u32 %s3308_s12, 4  ;;  %s3213_s15 = int_to_ptr.vmem [resolvable:$false] %s3212_s15 }
  0x6a   : > { %2816 = vmatprep.subr.bf16.mxu0 %v2815_v36  ;;  %v3540_v3 = vpack.c.bf16 %v360_v1, %v359_v0  ;;  %v1042_v4 = vld [vmem:[#allocation5 + $0x3f8] sm:$0xff]  ;;  %v1123_v6 = vld [vmem:[#allocation5 + $0x400] sm:$0xff]  ;;  %v1124_v7 = vld [vmem:[#allocation5 + $0x408] sm:$0xff]  ;;  %p3210_p6 = pnand %p3209_p13, %p3422_p10  ;;  %p3215_p12 = scmp.lt.s32.totalorder %s3596_s23, %s3213_s15 }
  0x6b   : > { %322 = vrot.lane.b32.xlu1 %v3487_v9, %s3304_s4  ;;  %307 = vrot.lane.b32.xlu0 %v3493_v13, %s3303_s21  ;;  %v2835_v5 = vpack.c.bf16 %v1042_v4, %v1041_v2  ;;  %v3547_v8 = vpack.c.bf16 %v1124_v7, %v1123_v6  ;;  %v361_v44 = vld [vmem:[#allocation5 + $0x10] sm:$0xff]  ;;  %v362_v45 = vld [vmem:[#allocation5 + $0x18] sm:$0xff]  ;;  %v363_v51 = vld [vmem:[#allocation5 + $0x20] sm:$0xff] }
  0x6c   : > { %2594 = vmatpush3.bf16.msra.mxu1 %v2591_v27  ;;  %v364_v52 = vld [vmem:[#allocation5 + $0x28] sm:$0xff]  ;;  %v1125_v56 = vld [vmem:[#allocation5 + $0x410] sm:$0xff]  ;;  %v1126_v57 = vld [vmem:[#allocation5 + $0x418] sm:$0xff]  ;;  %p3211_p8 = pneg %p3210_p6 }
  0x6d   : > { %2596 = vmatprep.subr.bf16.mxu1 %v2595_v34  ;;  %2818 = vmatpush3.bf16.msra.mxu0 %v2815_v36  ;;  %v2623_v58 = vpack.c.bf16 %v364_v52, %v363_v51  ;;  %v365_v59 = vld [vmem:[#allocation5 + $0x30] sm:$0xff]  ;;  %v2843_v0 = vpack.c.bf16 %v1126_v57, %v1125_v56  ;;  %v1127_v1 = vld [vmem:[#allocation5 + $0x420] sm:$0xff]  ;;  %v1128_v2 = vld [vmem:[#allocation5 + $0x428] sm:$0xff] }
  0x6e   : > { %2820 = vmatprep.subr.bf16.mxu0 %v2819_v43  ;;  %v2847_v7 = vpack.c.bf16 %v1128_v2, %v1127_v1  ;;  %v553_v52 = vld [vmem:[#allocation5 + $0x130] sm:$0xff]  ;;  %v1224_v56 = vld [vmem:[#allocation5 + $0x4a8] sm:$0xff] }
  0x6f   : > { %297 = vrot.lane.b32.xlu1 %v3493_v13, %s3301_s17  ;;  %317 = vrot.lane.b32.xlu0 %v3493_v13, %s3304_s4  ;;  %v557_v2 = vld [vmem:[#allocation5 + $0x150] sm:$0xff] }
  0x70   : > { %2598 = vmatpush3.bf16.msra.mxu1 %v2595_v34 }
  0x71   : > { %2600 = vmatprep.subr.bf16.mxu1 %v2599_v41  ;;  %2822 = vmatpush3.bf16.msra.mxu0 %v2819_v43 }
  0x72   : > { %2824 = vmatprep.subr.bf16.mxu0 %v2823_v49 }
  0x73   : > { %327 = vrot.lane.b32.xlu0 %v3493_v13, %s3305_s5  ;;  %220 = vrot.lane.b32.xlu1 %v3512_v33, %s3302_s19 }
  0x74   : > { %2602 = vmatpush3.bf16.msra.mxu1 %v2599_v41 }
  0x75   : > { %2604 = vmatprep.subr.bf16.mxu1 %v2603_v47  ;;  %2826 = vmatpush3.bf16.msra.mxu0 %v2823_v49 }
  0x76   : > { %2828 = vmatprep.subr.bf16.mxu0 %v2827_v55 }
  0x77   : > { %229 = vrot.lane.b32.xlu0 %v3519_v40, %s3302_s19  ;;  %233 = vrot.lane.b32.xlu1 %v3512_v33, %s3301_s17 }
  0x78   : > { %2606 = vmatpush3.bf16.msra.mxu1 %v2603_v47  ;;  %v2619_v47 = vpack.c.bf16 %v362_v45, %v361_v44  ;;  %v551_v45 = vld [vmem:[#allocation5 + $0x120] sm:$0xff] }
  0x79   : > { %2608 = vmatprep.subr.bf16.mxu1 %v2607_v53  ;;  %2830 = vmatpush3.bf16.msra.mxu0 %v2827_v55 }
  0x7a   : > { %2832 = vmatprep.subr.bf16.mxu0 %v2831_v62 }
  0x7b   : > { %237 = vrot.lane.b32.xlu0 %v3519_v40, %s3301_s17  ;;  %241 = vrot.lane.b32.xlu1 %v3512_v33, %s3303_s21  ;;  %s3214_s17 = scalar_lea.vmem %s3213_s15, 512 }
  0x7c   : > { %2610 = vmatpush3.bf16.msra.mxu1 %v2607_v53  ;;  %p3216_p11 = scmp.lt.s32.totalorder %s3214_s17, %s3208_s6 }
  0x7d   : > { %2612 = vmatprep.subr.bf16.mxu1 %v2611_v60  ;;  %2834 = vmatpush3.bf16.msra.mxu0 %v2831_v62 }
  0x7e   : > { %2836 = vmatprep.subr.bf16.mxu0 %v2835_v5  ;;  %p3217_p0 = por %p3216_p11, %p3215_p12 }
  0x7f   : > { %245 = vrot.lane.b32.xlu0 %v3519_v40, %s3303_s21  ;;  %249 = vrot.lane.b32.xlu1 %v3512_v33, %s3304_s4 }
  0x80   : > { %2614 = vmatpush3.bf16.msra.mxu1 %v2611_v60  ;;  %v366_v60 = vld [vmem:[#allocation5 + $0x38] sm:$0xff]  ;;  %p3218_p5 = pnand %p3217_p0, %p3211_p8 }
  0x81   : > { %2616 = vmatprep.subr.bf16.mxu1 %v3540_v3  ;;  %2838 = vmatpush3.bf16.msra.mxu0 %v2835_v5  ;;  %v2627_v6 = vpack.c.bf16 %v366_v60, %v365_v59  ;;  %v555_v60 = vld [vmem:[#allocation5 + $0x140] sm:$0xff] }
  0x82   : > { %2840 = vmatprep.subr.bf16.mxu0 %v3547_v8 }
  0x83   : > { %253 = vrot.lane.b32.xlu0 %v3519_v40, %s3304_s4  ;;  %257 = vrot.lane.b32.xlu1 %v3512_v33, %s3305_s5 }
  0x87   : > { %261 = vrot.lane.b32.xlu0 %v3519_v40, %s3305_s5  ;;  %265 = vrot.lane.b32.xlu1 %v3512_v33, %s3306_s7 }
  0x8b   : > { %269 = vrot.lane.b32.xlu0 %v3519_v40, %s3306_s7  ;;  %273 = vrot.lane.b32.xlu1 %v3512_v33, %s3307_s16 }
  0x8f   : > { %277 = vrot.lane.b32.xlu0 %v3519_v40, %s3307_s16  ;;  %332 = vrot.lane.b32.xlu1 %v3487_v9, %s3305_s5 }
  0x93   : > { %337 = vrot.lane.b32.xlu0 %v3493_v13, %s3306_s7  ;;  %342 = vrot.lane.b32.xlu1 %v3487_v9, %s3306_s7 }
  0x97   : > { %347 = vrot.lane.b32.xlu0 %v3493_v13, %s3307_s16  ;;  %352 = vrot.lane.b32.xlu1 %v3487_v9, %s3307_s16 }
  0xd5   : > { %v303_v10 = vpop.permute.xlu1 %302  ;;  %v293_v11 = vpop.permute.xlu0 %292 }
  0xd6   : > { %v304_v12 = vrot.slane %v303_v10, 1  ;;  %v294_v14 = vrot.slane %v293_v11, 1  ;;  %v367_v10 = vld [vmem:[#allocation5 + $0x40] sm:$0xff]  ;;  %v368_v11 = vld [vmem:[#allocation5 + $0x48] sm:$0xff] }
  0xd8   : > { %306 = vst.msk [vmem:[#allocation4 + $0x25] sm:$0x1] %vm211_vm0, %v304_v12  ;;  %296 = vst.msk [vmem:[#allocation4 + $0x24] sm:$0x1] %vm211_vm0, %v294_v14  ;;  %v1129_v12 = vld [vmem:[#allocation5 + $0x430] sm:$0xff]  ;;  %v1130_v14 = vld [vmem:[#allocation5 + $0x438] sm:$0xff] }
  0xd9   : > { %v313_v15 = vpop.permute.xlu1 %312  ;;  %v288_v16 = vpop.permute.xlu0 %287 }
  0xda   : > { %v314_v17 = vrot.slane %v313_v15, 1  ;;  %v289_v18 = vrot.slane %v288_v16, 1  ;;  %v2631_v15 = vpack.c.bf16 %v368_v11, %v367_v10  ;;  %v369_v16 = vld [vmem:[#allocation5 + $0x50] sm:$0xff]  ;;  %v559_v10 = vld [vmem:[#allocation5 + $0x160] sm:$0xff]  ;;  %v560_v11 = vld [vmem:[#allocation5 + $0x168] sm:$0xff] }
  0xdc   : > { %316 = vst.msk [vmem:[#allocation4 + $0x26] sm:$0x1] %vm211_vm0, %v314_v17  ;;  %291 = vst.msk [vmem:[#allocation4 + $0xc] sm:$0x1] %vm211_vm0, %v289_v18  ;;  %v370_v17 = vld [vmem:[#allocation5 + $0x58] sm:$0xff]  ;;  %v1131_v18 = vld [vmem:[#allocation5 + $0x440] sm:$0xff] }
  0xdd   : > { %v323_v19 = vpop.permute.xlu1 %322  ;;  %v308_v13 = vpop.permute.xlu0 %307 }
  0xde   : > { %v324_v20 = vrot.slane %v323_v19, 1  ;;  %v309_v9 = vrot.slane %v308_v13, 1  ;;  %v1132_v19 = vld [vmem:[#allocation5 + $0x448] sm:$0xff]  ;;  %v2635_v13 = vpack.c.bf16 %v370_v17, %v369_v16  ;;  %v561_v16 = vld [vmem:[#allocation5 + $0x170] sm:$0xff]  ;;  %v562_v17 = vld [vmem:[#allocation5 + $0x178] sm:$0xff] }
  0xe0   : > { %326 = vst.msk [vmem:[#allocation4 + $0x27] sm:$0x1] %vm211_vm0, %v324_v20  ;;  %311 = vst.msk [vmem:[#allocation4 + $0xe] sm:$0x1] %vm211_vm0, %v309_v9  ;;  %v2855_v20 = vpack.c.bf16 %v1132_v19, %v1131_v18  ;;  %v371_v9 = vld [vmem:[#allocation5 + $0x60] sm:$0xff]  ;;  %v1232_v19 = vld [vmem:[#allocation5 + $0x4e8] sm:$0xff] }
  0xe1   : > { %v298_v21 = vpop.permute.xlu1 %297  ;;  %v318_v22 = vpop.permute.xlu0 %317  ;;  %v1231_v18 = vld [vmem:[#allocation5 + $0x4e0] sm:$0xff] }
  0xe2   : > { %v299_v23 = vrot.slane %v298_v21, 1  ;;  %v319_v24 = vrot.slane %v318_v22, 1  ;;  %v372_v21 = vld [vmem:[#allocation5 + $0x68] sm:$0xff]  ;;  %v1133_v22 = vld [vmem:[#allocation5 + $0x450] sm:$0xff] }
  0xe4   : > { %301 = vst.msk [vmem:[#allocation4 + $0xd] sm:$0x1] %vm211_vm0, %v299_v23  ;;  %321 = vst.msk [vmem:[#allocation4 + $0xf] sm:$0x1] %vm211_vm0, %v319_v24  ;;  %v1134_v23 = vld [vmem:[#allocation5 + $0x458] sm:$0xff]  ;;  %v2639_v24 = vpack.c.bf16 %v372_v21, %v371_v9  ;;  %v643_v9 = vld [vmem:[#allocation5 + $0x180] sm:$0xff] }
  0xe5   : > { %v328_v25 = vpop.permute.xlu0 %327  ;;  %v221_v26 = vpop.permute.xlu1 %220  ;;  %v644_v21 = vld [vmem:[#allocation5 + $0x188] sm:$0xff] }
  0xe6   : > { %v329_v27 = vrot.slane %v328_v25, 1  ;;  %223 = vst.msk [vmem:[#allocation4 + $0x4] sm:$0x1] %vm211_vm0, %v221_v26  ;;  %v2859_v25 = vpack.c.bf16 %v1134_v23, %v1133_v22  ;;  %v373_v26 = vld [vmem:[#allocation5 + $0x70] sm:$0xff]  ;;  %v1234_v23 = vld [vmem:[#allocation5 + $0x4f8] sm:$0xff] }
  0xe7   : > { %v1233_v22 = vld [vmem:[#allocation5 + $0x4f0] sm:$0xff] }
  0xe8   : > { %331 = vst.msk [vmem:[#allocation4 + $0x10] sm:$0x1] %vm211_vm0, %v329_v27  ;;  %v374_v27 = vld [vmem:[#allocation5 + $0x78] sm:$0xff] }
  0xe9   : > { %v230_v28 = vpop.permute.xlu0 %229  ;;  %v234_v29 = vpop.permute.xlu1 %233 }
  0xea   : > { %232 = vst.msk [vmem:[#allocation4 + $0x1c] sm:$0x1] %vm211_vm0, %v230_v28  ;;  %236 = vst.msk [vmem:[#allocation4 + $0x5] sm:$0x1] %vm211_vm0, %v234_v29  ;;  %v1135_v28 = vld [vmem:[#allocation5 + $0x460] sm:$0xff]  ;;  %v1136_v29 = vld [vmem:[#allocation5 + $0x468] sm:$0xff] }
  0xed   : > { %v238_v30 = vpop.permute.xlu0 %237  ;;  %v242_v31 = vpop.permute.xlu1 %241 }
  0xee   : > { %240 = vst.msk [vmem:[#allocation4 + $0x1d] sm:$0x1] %vm211_vm0, %v238_v30  ;;  %244 = vst.msk [vmem:[#allocation4 + $0x6] sm:$0x1] %vm211_vm0, %v242_v31  ;;  %v2643_v30 = vpack.c.bf16 %v374_v27, %v373_v26  ;;  %v2863_v31 = vpack.c.bf16 %v1136_v29, %v1135_v28  ;;  %v645_v26 = vld [vmem:[#allocation5 + $0x190] sm:$0xff]  ;;  %v646_v27 = vld [vmem:[#allocation5 + $0x198] sm:$0xff] }
  0xef   : > { %v1315_v28 = vld [vmem:[#allocation5 + $0x500] sm:$0xff]  ;;  %v1316_v29 = vld [vmem:[#allocation5 + $0x508] sm:$0xff] }
  0xf1   : > { %v246_v32 = vpop.permute.xlu0 %245  ;;  %v250_v33 = vpop.permute.xlu1 %249 }
  0xf2   : > { %248 = vst.msk [vmem:[#allocation4 + $0x1e] sm:$0x1] %vm211_vm0, %v246_v32  ;;  %252 = vst.msk [vmem:[#allocation4 + $0x7] sm:$0x1] %vm211_vm0, %v250_v33  ;;  %v547_v32 = vld [vmem:[#allocation5 + $0x100] sm:$0xff]  ;;  %v548_v33 = vld [vmem:[#allocation5 + $0x108] sm:$0xff] }
  0xf5   : > { %v254_v34 = vpop.permute.xlu0 %253  ;;  %v258_v35 = vpop.permute.xlu1 %257 }
  0xf6   : > { %256 = vst.msk [vmem:[#allocation4 + $0x1f] sm:$0x1] %vm211_vm0, %v254_v34  ;;  %260 = vst.msk [vmem:[#allocation4 + $0x8] sm:$0x1] %vm211_vm0, %v258_v35  ;;  %v1137_v34 = vld [vmem:[#allocation5 + $0x470] sm:$0xff]  ;;  %v1138_v35 = vld [vmem:[#allocation5 + $0x478] sm:$0xff] }
  0xf9   : > { %v262_v36 = vpop.permute.xlu0 %261  ;;  %v266_v37 = vpop.permute.xlu1 %265  ;;  %v357_v55 = vld [vmem:[#allocation4] sm:$0xff] }
  0xfa   : > { %264 = vst.msk [vmem:[#allocation4 + $0x20] sm:$0x1] %vm211_vm0, %v262_v36  ;;  %268 = vst.msk [vmem:[#allocation4 + $0x9] sm:$0x1] %vm211_vm0, %v266_v37  ;;  %v2647_v36 = vpack.c.bf16 %v548_v33, %v547_v32  ;;  %v2867_v37 = vpack.c.bf16 %v1138_v35, %v1137_v34  ;;  %v2903_v32 = vpack.c.bf16 %v1316_v29, %v1315_v28  ;;  %v647_v33 = vld [vmem:[#allocation5 + $0x1a0] sm:$0xff]  ;;  %v648_v34 = vld [vmem:[#allocation5 + $0x1a8] sm:$0xff] }
  0xfb   : > { %v745_v28 = vld [vmem:[#allocation5 + $0x230] sm:$0xff]  ;;  %v746_v29 = vld [vmem:[#allocation5 + $0x238] sm:$0xff] }
  0xfd   : > { %v270_v38 = vpop.permute.xlu0 %269  ;;  %v274_v39 = vpop.permute.xlu1 %273  ;;  %v375_v40 = vld [vmem:[#allocation4 + $0x1] sm:$0xff]  ;;  %v1024_v41 = vld [vmem:[#allocation4 + $0x18] sm:$0xff] }
  0xfe   : > { %272 = vst.msk [vmem:[#allocation4 + $0x21] sm:$0x1] %vm211_vm0, %v270_v38  ;;  %276 = vst.msk [vmem:[#allocation4 + $0xa] sm:$0x1] %vm211_vm0, %v274_v39  ;;  %2125 = vmatprep.mubr.f32.mxu1 %v375_v40  ;;  %2370 = vmatprep.mubr.f32.mxu0 %v1024_v41  ;;  %v549_v38 = vld [vmem:[#allocation5 + $0x110] sm:$0xff]  ;;  %v550_v39 = vld [vmem:[#allocation5 + $0x118] sm:$0xff] }
  0xff   : > { %v1219_v40 = vld [vmem:[#allocation5 + $0x480] sm:$0xff]  ;;  %v1220_v41 = vld [vmem:[#allocation5 + $0x488] sm:$0xff] }
 0x100   : > { %v2871_v44 = vpack.c.bf16 %v1220_v41, %v1219_v40  ;;  %v649_v40 = vld [vmem:[#allocation5 + $0x1b0] sm:$0xff]  ;;  %v650_v41 = vld [vmem:[#allocation5 + $0x1b8] sm:$0xff] }
 0x101   : > { %v278_v42 = vpop.permute.xlu0 %277  ;;  %v333_v43 = vpop.permute.xlu1 %332 }
 0x102   : > { %280 = vst.msk [vmem:[#allocation4 + $0x22] sm:$0x1] %vm211_vm0, %v278_v42  ;;  %v334_v46 = vrot.slane %v333_v43, 1  ;;  %v2651_v42 = vpack.c.bf16 %v550_v39, %v549_v38  ;;  %v2687_v38 = vpack.c.bf16 %v648_v34, %v647_v33  ;;  %v2723_v34 = vpack.c.bf16 %v746_v29, %v745_v28 }
 0x104   : > { %336 = vst.msk [vmem:[#allocation4 + $0x28] sm:$0x1] %vm211_vm0, %v334_v46  ;;  %v552_v46 = vld [vmem:[#allocation5 + $0x128] sm:$0xff] }
 0x105   : > { %v338_v48 = vpop.permute.xlu0 %337  ;;  %v343_v49 = vpop.permute.xlu1 %342  ;;  %v376_v50 = vld [vmem:[#allocation4 + $0x9] sm:$0xff]  ;;  %v1216_v57 = vld [vmem:[#allocation4 + $0x1a] sm:$0xff] }
 0x106   : > { %v339_v53 = vrot.slane %v338_v48, 1  ;;  %v344_v54 = vrot.slane %v343_v49, 1  ;;  %2126 = vmatmul.mubr.f32.vlgmr.msra.gmra.mrb[0].mxu1 %v376_v50  ;;  %v358_v43 = vld [vmem:[#allocation4 + $0x8] sm:$0xff]  ;;  %v1221_v48 = vld [vmem:[#allocation5 + $0x490] sm:$0xff]  ;;  %v2655_v50 = vpack.c.bf16 %v552_v46, %v551_v45  ;;  %v2691_v46 = vpack.c.bf16 %v650_v41, %v649_v40 }
 0x107   : > { %2618 = vmatpush3.bf16.msra.mxu1 %v3540_v3  ;;  %2160 = vmatprep.mubr.f32.mxu1 %v357_v55  ;;  %v1120_v3 = vld [vmem:[#allocation4 + $0x19] sm:$0xff]  ;;  %v1222_v49 = vld [vmem:[#allocation5 + $0x498] sm:$0xff]  ;;  %v1223_v55 = vld [vmem:[#allocation5 + $0x4a0] sm:$0xff] }
 0x108   : > { %341 = vst.msk [vmem:[#allocation4 + $0x11] sm:$0x1] %vm211_vm0, %v339_v53  ;;  %346 = vst.msk [vmem:[#allocation4 + $0x29] sm:$0x1] %vm211_vm0, %v344_v54  ;;  %2620 = vmatprep.subr.bf16.mxu1 %v2619_v47  ;;  %v2875_v51 = vpack.c.bf16 %v1222_v49, %v1221_v48  ;;  %v554_v53 = vld [vmem:[#allocation5 + $0x138] sm:$0xff]  ;;  %v2879_v59 = vpack.c.bf16 %v1224_v56, %v1223_v55  ;;  %v651_v48 = vld [vmem:[#allocation5 + $0x1c0] sm:$0xff] }
 0x109   : > { %v348_v61 = vpop.permute.xlu0 %347  ;;  %v353_v62 = vpop.permute.xlu1 %352  ;;  %v1025_v63 = vld [vmem:[#allocation4 + $0x20] sm:$0xff]  ;;  %v652_v49 = vld [vmem:[#allocation5 + $0x1c8] sm:$0xff]  ;;  %v654_v55 = vld [vmem:[#allocation5 + $0x1d8] sm:$0xff] }
 0x10a   : > { %v349_v4 = vrot.slane %v348_v61, 1  ;;  %v354_v5 = vrot.slane %v353_v62, 1  ;;  %2371 = vmatmul.mubr.f32.vlgmr.msra.gmra.mrb[0].mxu0 %v1025_v63  ;;  %v556_v61 = vld [vmem:[#allocation5 + $0x148] sm:$0xff]  ;;  %v1225_v62 = vld [vmem:[#allocation5 + $0x4b0] sm:$0xff]  ;;  %v1226_v63 = vld [vmem:[#allocation5 + $0x4b8] sm:$0xff] }
 0x10b   : > { %2622 = vmatpush3.bf16.msra.mxu1 %v2619_v47  ;;  %2842 = vmatpush3.bf16.msra.mxu0 %v3547_v8  ;;  %v2851_v8 = vpack.c.bf16 %v1130_v14, %v1129_v12  ;;  %v544_v47 = vld [vmem:[#allocation4 + $0x2] sm:$0xff]  ;;  %v2883_v1 = vpack.c.bf16 %v1226_v63, %v1225_v62  ;;  %v1323_v56 = vld [vmem:[#allocation5 + $0x540] sm:$0xff] }
 0x10c   : > { %351 = vst.msk [vmem:[#allocation4 + $0x12] sm:$0x1] %vm211_vm0, %v349_v4  ;;  %356 = vst.msk [vmem:[#allocation4 + $0x2a] sm:$0x1] %vm211_vm0, %v354_v5  ;;  %2405 = vmatprep.mubr.f32.mxu0 %v1120_v3  ;;  %2624 = vmatprep.subr.bf16.mxu1 %v2623_v58  ;;  %v1121_v54 = vld [vmem:[#allocation4 + $0x21] sm:$0xff]  ;;  %v1227_v5 = vld [vmem:[#allocation5 + $0x4c0] sm:$0xff] }
 0x10d   : > { %2844 = vmatprep.subr.bf16.mxu0 %v2843_v0  ;;  %v558_v4 = vld [vmem:[#allocation5 + $0x158] sm:$0xff]  ;;  %v1228_v3 = vld [vmem:[#allocation5 + $0x4c8] sm:$0xff]  ;;  %v1229_v12 = vld [vmem:[#allocation5 + $0x4d0] sm:$0xff] }
 0x10e   : > { %v1230_v14 = vld [vmem:[#allocation5 + $0x4d8] sm:$0xff]  ;;  %v1312_v45 = vld [vmem:[#allocation4 + $0x1b] sm:$0xff] }
 0x10f   : > { %2626 = vmatpush3.bf16.msra.mxu1 %v2623_v58  ;;  %2846 = vmatpush3.bf16.msra.mxu0 %v2843_v0  ;;  %v2659_v58 = vpack.c.bf16 %v554_v53, %v553_v52  ;;  %v2663_v0 = vpack.c.bf16 %v556_v61, %v555_v60  ;;  %v640_v35 = vld [vmem:[#allocation4 + $0x3] sm:$0xff]  ;;  %v2695_v52 = vpack.c.bf16 %v652_v49, %v651_v48  ;;  %v655_v60 = vld [vmem:[#allocation5 + $0x1e0] sm:$0xff]  ;;  %v656_v61 = vld [vmem:[#allocation5 + $0x1e8] sm:$0xff] }
 0x110   : > { %2628 = vmatprep.subr.bf16.mxu1 %v2627_v6  ;;  %2848 = vmatprep.subr.bf16.mxu0 %v2847_v7  ;;  %v1325_v62 = vld [vmem:[#allocation5 + $0x550] sm:$0xff]  ;;  %v1326_v63 = vld [vmem:[#allocation5 + $0x558] sm:$0xff]  ;;  %v751_v48 = vld [vmem:[#allocation5 + $0x260] sm:$0xff] }
 0x111   : > { %v1408_v33 = vld [vmem:[#allocation4 + $0x1c] sm:$0xff] }
 0x112   : > { %v752_v49 = vld [vmem:[#allocation5 + $0x268] sm:$0xff] }
 0x113   : > { %2630 = vmatpush3.bf16.msra.mxu1 %v2627_v6  ;;  %2850 = vmatpush3.bf16.msra.mxu0 %v2847_v7  ;;  %v2667_v6 = vpack.c.bf16 %v558_v4, %v557_v2  ;;  %v2887_v7 = vpack.c.bf16 %v1228_v3, %v1227_v5  ;;  %v657_v2 = vld [vmem:[#allocation5 + $0x1f0] sm:$0xff]  ;;  %v658_v4 = vld [vmem:[#allocation5 + $0x1f8] sm:$0xff]  ;;  %v1327_v5 = vld [vmem:[#allocation5 + $0x560] sm:$0xff] }
 0x114   : > { %2632 = vmatprep.subr.bf16.mxu1 %v2631_v15  ;;  %2852 = vmatprep.subr.bf16.mxu0 %v2851_v8  ;;  %v1328_v3 = vld [vmem:[#allocation5 + $0x568] sm:$0xff] }
 0x117   : > { %2634 = vmatpush3.bf16.msra.mxu1 %v2631_v15  ;;  %2854 = vmatpush3.bf16.msra.mxu0 %v2851_v8  ;;  %v2671_v15 = vpack.c.bf16 %v560_v11, %v559_v10  ;;  %v2891_v8 = vpack.c.bf16 %v1230_v14, %v1229_v12  ;;  %v739_v10 = vld [vmem:[#allocation5 + $0x200] sm:$0xff]  ;;  %v740_v11 = vld [vmem:[#allocation5 + $0x208] sm:$0xff]  ;;  %v1329_v12 = vld [vmem:[#allocation5 + $0x570] sm:$0xff] }
 0x118   : > { %2636 = vmatprep.subr.bf16.mxu1 %v2635_v13  ;;  %2856 = vmatprep.subr.bf16.mxu0 %v2855_v20  ;;  %v1330_v14 = vld [vmem:[#allocation5 + $0x578] sm:$0xff] }
 0x11b   : > { %2638 = vmatpush3.bf16.msra.mxu1 %v2635_v13  ;;  %2858 = vmatpush3.bf16.msra.mxu0 %v2855_v20  ;;  %v2675_v13 = vpack.c.bf16 %v562_v17, %v561_v16  ;;  %v2895_v20 = vpack.c.bf16 %v1232_v19, %v1231_v18  ;;  %v741_v16 = vld [vmem:[#allocation5 + $0x210] sm:$0xff]  ;;  %v742_v17 = vld [vmem:[#allocation5 + $0x218] sm:$0xff]  ;;  %v1411_v18 = vld [vmem:[#allocation5 + $0x580] sm:$0xff] }
 0x11c   : > { %2640 = vmatprep.subr.bf16.mxu1 %v2639_v24  ;;  %2860 = vmatprep.subr.bf16.mxu0 %v2859_v25  ;;  %v1412_v19 = vld [vmem:[#allocation5 + $0x588] sm:$0xff] }
 0x11f   : > { %2642 = vmatpush3.bf16.msra.mxu1 %v2639_v24  ;;  %2862 = vmatpush3.bf16.msra.mxu0 %v2859_v25  ;;  %v2679_v24 = vpack.c.bf16 %v644_v21, %v643_v9  ;;  %v2899_v25 = vpack.c.bf16 %v1234_v23, %v1233_v22  ;;  %v2935_v9 = vpack.c.bf16 %v1412_v19, %v1411_v18  ;;  %v743_v21 = vld [vmem:[#allocation5 + $0x220] sm:$0xff]  ;;  %v744_v22 = vld [vmem:[#allocation5 + $0x228] sm:$0xff]  ;;  %v736_v23 = vld [vmem:[#allocation4 + $0x4] sm:$0xff] }
 0x120   : > { %2644 = vmatprep.subr.bf16.mxu1 %v2643_v30  ;;  %2864 = vmatprep.subr.bf16.mxu0 %v2863_v31  ;;  %v841_v18 = vld [vmem:[#allocation5 + $0x2b0] sm:$0xff]  ;;  %v842_v19 = vld [vmem:[#allocation5 + $0x2b8] sm:$0xff] }
 0x123   : > { %2646 = vmatpush3.bf16.msra.mxu1 %v2643_v30  ;;  %2866 = vmatpush3.bf16.msra.mxu0 %v2863_v31  ;;  %v2683_v30 = vpack.c.bf16 %v646_v27, %v645_v26  ;;  %v545_v31 = vld [vmem:[#allocation4 + $0xa] sm:$0xff]  ;;  %v2719_v26 = vpack.c.bf16 %v744_v22, %v743_v21  ;;  %v1504_v21 = vld [vmem:[#allocation4 + $0x1d] sm:$0xff]  ;;  %v2755_v22 = vpack.c.bf16 %v842_v19, %v841_v18 }
 0x124   : > { %2648 = vmatprep.subr.bf16.mxu1 %v2647_v36  ;;  %2868 = vmatprep.subr.bf16.mxu0 %v2867_v37 }
 0x126   : > { %2161 = vmatmul.mubr.f32.vlgmr.msra.gmra.mrb[0].mxu1 %v358_v43  ;;  %v1319_v43 = vld [vmem:[#allocation5 + $0x520] sm:$0xff] }
 0x127   : > { %2650 = vmatpush3.bf16.msra.mxu1 %v2647_v36  ;;  %2195 = vmatprep.mubr.f32.mxu1 %v544_v47  ;;  %v1317_v36 = vld [vmem:[#allocation5 + $0x510] sm:$0xff] }
 0x128   : > { %2870 = vmatpush3.bf16.msra.mxu0 %v2867_v37  ;;  %2652 = vmatprep.subr.bf16.mxu1 %v2651_v42  ;;  %v1318_v37 = vld [vmem:[#allocation5 + $0x518] sm:$0xff] }
 0x129   : > { %2872 = vmatprep.subr.bf16.mxu0 %v2871_v44  ;;  %v2907_v39 = vpack.c.bf16 %v1318_v37, %v1317_v36  ;;  %v747_v36 = vld [vmem:[#allocation5 + $0x240] sm:$0xff]  ;;  %v748_v37 = vld [vmem:[#allocation5 + $0x248] sm:$0xff] }
 0x12a   : > { %v2727_v40 = vpack.c.bf16 %v748_v37, %v747_v36  ;;  %v847_v36 = vld [vmem:[#allocation5 + $0x2e0] sm:$0xff]  ;;  %v848_v37 = vld [vmem:[#allocation5 + $0x2e8] sm:$0xff] }
 0x12b   : > { %2406 = vmatmul.mubr.f32.vlgmr.msra.gmra.mrb[0].mxu0 %v1121_v54  ;;  %2654 = vmatpush3.bf16.msra.mxu1 %v2651_v42  ;;  %v1217_v42 = vld [vmem:[#allocation4 + $0x22] sm:$0xff] }
 0x12c   : > { %2874 = vmatpush3.bf16.msra.mxu0 %v2871_v44  ;;  %2440 = vmatprep.mubr.f32.mxu0 %v1216_v57  ;;  %v1320_v44 = vld [vmem:[#allocation5 + $0x528] sm:$0xff]  ;;  %v653_v54 = vld [vmem:[#allocation5 + $0x1d0] sm:$0xff] }
 0x12d   : > { %2656 = vmatprep.subr.bf16.mxu1 %v2655_v50  ;;  %2876 = vmatprep.subr.bf16.mxu0 %v2875_v51  ;;  %v2911_v47 = vpack.c.bf16 %v1320_v44, %v1319_v43  ;;  %v1324_v57 = vld [vmem:[#allocation5 + $0x548] sm:$0xff]  ;;  %v750_v43 = vld [vmem:[#allocation5 + $0x258] sm:$0xff]  ;;  %v1419_v44 = vld [vmem:[#allocation5 + $0x5c0] sm:$0xff] }
 0x12f   : > { %2658 = vmatpush3.bf16.msra.mxu1 %v2655_v50  ;;  %v1321_v50 = vld [vmem:[#allocation5 + $0x530] sm:$0xff] }
 0x130   : > { %2878 = vmatpush3.bf16.msra.mxu0 %v2875_v51  ;;  %2660 = vmatprep.subr.bf16.mxu1 %v2659_v58  ;;  %v1322_v51 = vld [vmem:[#allocation5 + $0x538] sm:$0xff] }
 0x131   : > { %2880 = vmatprep.subr.bf16.mxu0 %v2879_v59  ;;  %v2915_v53 = vpack.c.bf16 %v1322_v51, %v1321_v50  ;;  %v1421_v50 = vld [vmem:[#allocation5 + $0x5d0] sm:$0xff]  ;;  %v1422_v51 = vld [vmem:[#allocation5 + $0x5d8] sm:$0xff] }
 0x133   : > { %2662 = vmatpush3.bf16.msra.mxu1 %v2659_v58  ;;  %v2699_v58 = vpack.c.bf16 %v654_v55, %v653_v54  ;;  %v753_v54 = vld [vmem:[#allocation5 + $0x270] sm:$0xff]  ;;  %v754_v55 = vld [vmem:[#allocation5 + $0x278] sm:$0xff] }
 0x134   : > { %2882 = vmatpush3.bf16.msra.mxu0 %v2879_v59  ;;  %2664 = vmatprep.subr.bf16.mxu1 %v2663_v0  ;;  %v2919_v59 = vpack.c.bf16 %v1324_v57, %v1323_v56  ;;  %v1423_v56 = vld [vmem:[#allocation5 + $0x5e0] sm:$0xff]  ;;  %v1424_v57 = vld [vmem:[#allocation5 + $0x5e8] sm:$0xff] }
 0x135   : > { %2884 = vmatprep.subr.bf16.mxu0 %v2883_v1 }
 0x137   : > { %2666 = vmatpush3.bf16.msra.mxu1 %v2663_v0  ;;  %v2703_v0 = vpack.c.bf16 %v656_v61, %v655_v60  ;;  %v835_v60 = vld [vmem:[#allocation5 + $0x280] sm:$0xff]  ;;  %v836_v61 = vld [vmem:[#allocation5 + $0x288] sm:$0xff] }
 0x138   : > { %2886 = vmatpush3.bf16.msra.mxu0 %v2883_v1  ;;  %2668 = vmatprep.subr.bf16.mxu1 %v2667_v6  ;;  %v2923_v1 = vpack.c.bf16 %v1326_v63, %v1325_v62  ;;  %v1425_v62 = vld [vmem:[#allocation5 + $0x5f0] sm:$0xff]  ;;  %v1426_v63 = vld [vmem:[#allocation5 + $0x5f8] sm:$0xff] }
 0x139   : > { %2888 = vmatprep.subr.bf16.mxu0 %v2887_v7 }
 0x13b   : > { %2670 = vmatpush3.bf16.msra.mxu1 %v2667_v6  ;;  %v2707_v6 = vpack.c.bf16 %v658_v4, %v657_v2  ;;  %v837_v2 = vld [vmem:[#allocation5 + $0x290] sm:$0xff]  ;;  %v838_v4 = vld [vmem:[#allocation5 + $0x298] sm:$0xff] }
 0x13c   : > { %2890 = vmatpush3.bf16.msra.mxu0 %v2887_v7  ;;  %2672 = vmatprep.subr.bf16.mxu1 %v2671_v15  ;;  %v2927_v7 = vpack.c.bf16 %v1328_v3, %v1327_v5  ;;  %v1507_v5 = vld [vmem:[#allocation5 + $0x600] sm:$0xff]  ;;  %v1508_v3 = vld [vmem:[#allocation5 + $0x608] sm:$0xff] }
 0x13d   : > { %2892 = vmatprep.subr.bf16.mxu0 %v2891_v8 }
 0x13f   : > { %2674 = vmatpush3.bf16.msra.mxu1 %v2671_v15  ;;  %v2711_v15 = vpack.c.bf16 %v740_v11, %v739_v10  ;;  %v832_v10 = vld [vmem:[#allocation4 + $0x5] sm:$0xff]  ;;  %v2967_v11 = vpack.c.bf16 %v1508_v3, %v1507_v5 }
 0x140   : > { %2894 = vmatpush3.bf16.msra.mxu0 %v2891_v8  ;;  %2676 = vmatprep.subr.bf16.mxu1 %v2675_v13  ;;  %v2931_v8 = vpack.c.bf16 %v1330_v14, %v1329_v12  ;;  %v839_v12 = vld [vmem:[#allocation5 + $0x2a0] sm:$0xff]  ;;  %v840_v14 = vld [vmem:[#allocation5 + $0x2a8] sm:$0xff]  ;;  %v937_v5 = vld [vmem:[#allocation5 + $0x330] sm:$0xff] }
 0x141   : > { %2896 = vmatprep.subr.bf16.mxu0 %v2895_v20  ;;  %v938_v3 = vld [vmem:[#allocation5 + $0x338] sm:$0xff] }
 0x143   : > { %2678 = vmatpush3.bf16.msra.mxu1 %v2675_v13  ;;  %v2715_v13 = vpack.c.bf16 %v742_v17, %v741_v16  ;;  %v2751_v16 = vpack.c.bf16 %v840_v14, %v839_v12  ;;  %v2787_v12 = vpack.c.bf16 %v938_v3, %v937_v5 }
 0x144   : > { %2898 = vmatpush3.bf16.msra.mxu0 %v2895_v20  ;;  %2680 = vmatprep.subr.bf16.mxu1 %v2679_v24  ;;  %v641_v20 = vld [vmem:[#allocation4 + $0xb] sm:$0xff] }
 0x145   : > { %2900 = vmatprep.subr.bf16.mxu0 %v2899_v25 }
 0x146   : > { %2196 = vmatmul.mubr.f32.vlgmr.msra.gmra.mrb[0].mxu1 %v545_v31  ;;  %v1415_v31 = vld [vmem:[#allocation5 + $0x5a0] sm:$0xff] }
 0x147   : > { %2682 = vmatpush3.bf16.msra.mxu1 %v2679_v24  ;;  %2230 = vmatprep.mubr.f32.mxu1 %v640_v35  ;;  %v1413_v24 = vld [vmem:[#allocation5 + $0x590] sm:$0xff] }
 0x148   : > { %2902 = vmatpush3.bf16.msra.mxu0 %v2899_v25  ;;  %2684 = vmatprep.subr.bf16.mxu1 %v2683_v30  ;;  %v1414_v25 = vld [vmem:[#allocation5 + $0x598] sm:$0xff] }
 0x149   : > { %2904 = vmatprep.subr.bf16.mxu0 %v2903_v32  ;;  %v2939_v27 = vpack.c.bf16 %v1414_v25, %v1413_v24  ;;  %v843_v24 = vld [vmem:[#allocation5 + $0x2c0] sm:$0xff]  ;;  %v844_v25 = vld [vmem:[#allocation5 + $0x2c8] sm:$0xff] }
 0x14a   : > { %v2759_v28 = vpack.c.bf16 %v844_v25, %v843_v24  ;;  %v943_v24 = vld [vmem:[#allocation5 + $0x360] sm:$0xff]  ;;  %v944_v25 = vld [vmem:[#allocation5 + $0x368] sm:$0xff] }
 0x14b   : > { %2441 = vmatmul.mubr.f32.vlgmr.msra.gmra.mrb[0].mxu0 %v1217_v42  ;;  %2686 = vmatpush3.bf16.msra.mxu1 %v2683_v30  ;;  %v1313_v30 = vld [vmem:[#allocation4 + $0x23] sm:$0xff] }
 0x14c   : > { %2906 = vmatpush3.bf16.msra.mxu0 %v2903_v32  ;;  %2475 = vmatprep.mubr.f32.mxu0 %v1312_v45  ;;  %v1416_v32 = vld [vmem:[#allocation5 + $0x5a8] sm:$0xff]  ;;  %v749_v42 = vld [vmem:[#allocation5 + $0x250] sm:$0xff] }
 0x14d   : > { %2688 = vmatprep.subr.bf16.mxu1 %v2687_v38  ;;  %2908 = vmatprep.subr.bf16.mxu0 %v2907_v39  ;;  %v2943_v35 = vpack.c.bf16 %v1416_v32, %v1415_v31  ;;  %v1420_v45 = vld [vmem:[#allocation5 + $0x5c8] sm:$0xff]  ;;  %v846_v31 = vld [vmem:[#allocation5 + $0x2d8] sm:$0xff]  ;;  %v1515_v32 = vld [vmem:[#allocation5 + $0x640] sm:$0xff] }
 0x14f   : > { %2690 = vmatpush3.bf16.msra.mxu1 %v2687_v38  ;;  %v1417_v38 = vld [vmem:[#allocation5 + $0x5b0] sm:$0xff] }
 0x150   : > { %2910 = vmatpush3.bf16.msra.mxu0 %v2907_v39  ;;  %2692 = vmatprep.subr.bf16.mxu1 %v2691_v46  ;;  %v1418_v39 = vld [vmem:[#allocation5 + $0x5b8] sm:$0xff] }
 0x151   : > { %2912 = vmatprep.subr.bf16.mxu0 %v2911_v47  ;;  %v2947_v41 = vpack.c.bf16 %v1418_v39, %v1417_v38  ;;  %v1517_v38 = vld [vmem:[#allocation5 + $0x650] sm:$0xff]  ;;  %v1518_v39 = vld [vmem:[#allocation5 + $0x658] sm:$0xff] }
 0x153   : > { %2694 = vmatpush3.bf16.msra.mxu1 %v2691_v46  ;;  %v2731_v46 = vpack.c.bf16 %v750_v43, %v749_v42  ;;  %v849_v42 = vld [vmem:[#allocation5 + $0x2f0] sm:$0xff]  ;;  %v850_v43 = vld [vmem:[#allocation5 + $0x2f8] sm:$0xff] }
 0x154   : > { %2914 = vmatpush3.bf16.msra.mxu0 %v2911_v47  ;;  %2696 = vmatprep.subr.bf16.mxu1 %v2695_v52  ;;  %v2951_v47 = vpack.c.bf16 %v1420_v45, %v1419_v44  ;;  %v1519_v44 = vld [vmem:[#allocation5 + $0x660] sm:$0xff]  ;;  %v1520_v45 = vld [vmem:[#allocation5 + $0x668] sm:$0xff] }
 0x155   : > { %2916 = vmatprep.subr.bf16.mxu0 %v2915_v53 }
 0x157   : > { %2698 = vmatpush3.bf16.msra.mxu1 %v2695_v52  ;;  %v2735_v52 = vpack.c.bf16 %v752_v49, %v751_v48  ;;  %v931_v48 = vld [vmem:[#allocation5 + $0x300] sm:$0xff]  ;;  %v932_v49 = vld [vmem:[#allocation5 + $0x308] sm:$0xff] }
 0x158   : > { %2918 = vmatpush3.bf16.msra.mxu0 %v2915_v53  ;;  %2700 = vmatprep.subr.bf16.mxu1 %v2699_v58  ;;  %v2955_v53 = vpack.c.bf16 %v1422_v51, %v1421_v50  ;;  %v1521_v50 = vld [vmem:[#allocation5 + $0x670] sm:$0xff]  ;;  %v1522_v51 = vld [vmem:[#allocation5 + $0x678] sm:$0xff] }
 0x159   : > { %2920 = vmatprep.subr.bf16.mxu0 %v2919_v59 }
 0x15b   : > { %2702 = vmatpush3.bf16.msra.mxu1 %v2699_v58  ;;  %v2739_v58 = vpack.c.bf16 %v754_v55, %v753_v54  ;;  %v933_v54 = vld [vmem:[#allocation5 + $0x310] sm:$0xff]  ;;  %v934_v55 = vld [vmem:[#allocation5 + $0x318] sm:$0xff] }
 0x15c   : > { %2922 = vmatpush3.bf16.msra.mxu0 %v2919_v59  ;;  %2704 = vmatprep.subr.bf16.mxu1 %v2703_v0  ;;  %v2959_v59 = vpack.c.bf16 %v1424_v57, %v1423_v56  ;;  %v1603_v56 = vld [vmem:[#allocation5 + $0x680] sm:$0xff]  ;;  %v1604_v57 = vld [vmem:[#allocation5 + $0x688] sm:$0xff] }
 0x15d   : > { %2924 = vmatprep.subr.bf16.mxu0 %v2923_v1 }
 0x15f   : > { %2706 = vmatpush3.bf16.msra.mxu1 %v2703_v0  ;;  %v2743_v0 = vpack.c.bf16 %v836_v61, %v835_v60  ;;  %v928_v60 = vld [vmem:[#allocation4 + $0x6] sm:$0xff]  ;;  %v2999_v61 = vpack.c.bf16 %v1604_v57, %v1603_v56 }
 0x160   : > { %2926 = vmatpush3.bf16.msra.mxu0 %v2923_v1  ;;  %2708 = vmatprep.subr.bf16.mxu1 %v2707_v6  ;;  %v2963_v1 = vpack.c.bf16 %v1426_v63, %v1425_v62  ;;  %v935_v62 = vld [vmem:[#allocation5 + $0x320] sm:$0xff]  ;;  %v936_v63 = vld [vmem:[#allocation5 + $0x328] sm:$0xff] }
 0x161   : > { %2928 = vmatprep.subr.bf16.mxu0 %v2927_v7 }
 0x163   : > { %2710 = vmatpush3.bf16.msra.mxu1 %v2707_v6  ;;  %v2747_v6 = vpack.c.bf16 %v838_v4, %v837_v2  ;;  %v2783_v2 = vpack.c.bf16 %v936_v63, %v935_v62 }
 0x164   : > { %2930 = vmatpush3.bf16.msra.mxu0 %v2927_v7  ;;  %2712 = vmatprep.subr.bf16.mxu1 %v2711_v15  ;;  %v737_v7 = vld [vmem:[#allocation4 + $0xc] sm:$0xff] }
 0x165   : > { %2932 = vmatprep.subr.bf16.mxu0 %v2931_v8 }
 0x166   : > { %2231 = vmatmul.mubr.f32.vlgmr.msra.gmra.mrb[0].mxu1 %v641_v20  ;;  %v1511_v20 = vld [vmem:[#allocation5 + $0x620] sm:$0xff] }
 0x167   : > { %2714 = vmatpush3.bf16.msra.mxu1 %v2711_v15  ;;  %2265 = vmatprep.mubr.f32.mxu1 %v736_v23  ;;  %v1509_v15 = vld [vmem:[#allocation5 + $0x610] sm:$0xff] }
 0x168   : > { %2934 = vmatpush3.bf16.msra.mxu0 %v2931_v8  ;;  %2716 = vmatprep.subr.bf16.mxu1 %v2715_v13  ;;  %v1510_v8 = vld [vmem:[#allocation5 + $0x618] sm:$0xff] }
 0x169   : > { %2936 = vmatprep.subr.bf16.mxu0 %v2935_v9  ;;  %v2971_v17 = vpack.c.bf16 %v1510_v8, %v1509_v15  ;;  %v939_v15 = vld [vmem:[#allocation5 + $0x340] sm:$0xff]  ;;  %v940_v8 = vld [vmem:[#allocation5 + $0x348] sm:$0xff] }
 0x16a   : > { %v2791_v18 = vpack.c.bf16 %v940_v8, %v939_v15 }
 0x16b   : > { %2476 = vmatmul.mubr.f32.vlgmr.msra.gmra.mrb[0].mxu0 %v1313_v30  ;;  %2718 = vmatpush3.bf16.msra.mxu1 %v2715_v13  ;;  %v1409_v13 = vld [vmem:[#allocation4 + $0x24] sm:$0xff] }
 0x16c   : > { %2938 = vmatpush3.bf16.msra.mxu0 %v2935_v9  ;;  %2510 = vmatprep.mubr.f32.mxu0 %v1408_v33  ;;  %v1512_v9 = vld [vmem:[#allocation5 + $0x628] sm:$0xff]  ;;  %v845_v30 = vld [vmem:[#allocation5 + $0x2d0] sm:$0xff] }
 0x16d   : > { %2720 = vmatprep.subr.bf16.mxu1 %v2719_v26  ;;  %2940 = vmatprep.subr.bf16.mxu0 %v2939_v27  ;;  %v2975_v23 = vpack.c.bf16 %v1512_v9, %v1511_v20  ;;  %v1516_v33 = vld [vmem:[#allocation5 + $0x648] sm:$0xff]  ;;  %v942_v20 = vld [vmem:[#allocation5 + $0x358] sm:$0xff]  ;;  %v1611_v9 = vld [vmem:[#allocation5 + $0x6c0] sm:$0xff] }
 0x16f   : > { %2722 = vmatpush3.bf16.msra.mxu1 %v2719_v26  ;;  %v1513_v26 = vld [vmem:[#allocation5 + $0x630] sm:$0xff] }
 0x170   : > { %2942 = vmatpush3.bf16.msra.mxu0 %v2939_v27  ;;  %2724 = vmatprep.subr.bf16.mxu1 %v2723_v34  ;;  %v1514_v27 = vld [vmem:[#allocation5 + $0x638] sm:$0xff] }
 0x171   : > { %2944 = vmatprep.subr.bf16.mxu0 %v2943_v35  ;;  %v2979_v29 = vpack.c.bf16 %v1514_v27, %v1513_v26  ;;  %v1613_v26 = vld [vmem:[#allocation5 + $0x6d0] sm:$0xff]  ;;  %v1614_v27 = vld [vmem:[#allocation5 + $0x6d8] sm:$0xff] }
 0x173   : > { %2726 = vmatpush3.bf16.msra.mxu1 %v2723_v34  ;;  %v2763_v34 = vpack.c.bf16 %v846_v31, %v845_v30  ;;  %v945_v30 = vld [vmem:[#allocation5 + $0x370] sm:$0xff]  ;;  %v946_v31 = vld [vmem:[#allocation5 + $0x378] sm:$0xff] }
 0x174   : > { %2946 = vmatpush3.bf16.msra.mxu0 %v2943_v35  ;;  %2728 = vmatprep.subr.bf16.mxu1 %v2727_v40  ;;  %v2983_v35 = vpack.c.bf16 %v1516_v33, %v1515_v32  ;;  %v1615_v32 = vld [vmem:[#allocation5 + $0x6e0] sm:$0xff]  ;;  %v1616_v33 = vld [vmem:[#allocation5 + $0x6e8] sm:$0xff] }
 0x175   : > { %2948 = vmatprep.subr.bf16.mxu0 %v2947_v41 }
 0x177   : > { %2730 = vmatpush3.bf16.msra.mxu1 %v2727_v40  ;;  %v2767_v40 = vpack.c.bf16 %v848_v37, %v847_v36  ;;  %v1617_v36 = vld [vmem:[#allocation5 + $0x6f0] sm:$0xff]  ;;  %v1618_v37 = vld [vmem:[#allocation5 + $0x6f8] sm:$0xff] }
 0x178   : > { %2950 = vmatpush3.bf16.msra.mxu0 %v2947_v41  ;;  %2732 = vmatprep.subr.bf16.mxu1 %v2731_v46  ;;  %v2987_v41 = vpack.c.bf16 %v1518_v39, %v1517_v38  ;;  %v3027_v38 = vpack.c.bf16 %v1618_v37, %v1617_v36  ;;  %v929_v39 = vld [vmem:[#allocation4 + $0xe] sm:$0xff] }
 0x179   : > { %2952 = vmatprep.subr.bf16.mxu0 %v2951_v47 }
 0x17b   : > { %2734 = vmatpush3.bf16.msra.mxu1 %v2731_v46  ;;  %v2771_v46 = vpack.c.bf16 %v850_v43, %v849_v42 }
 0x17c   : > { %2954 = vmatpush3.bf16.msra.mxu0 %v2951_v47  ;;  %2736 = vmatprep.subr.bf16.mxu1 %v2735_v52  ;;  %v2991_v47 = vpack.c.bf16 %v1520_v45, %v1519_v44 }
 0x17d   : > { %2956 = vmatprep.subr.bf16.mxu0 %v2955_v53 }
 0x17f   : > { %2738 = vmatpush3.bf16.msra.mxu1 %v2735_v52  ;;  %v2775_v52 = vpack.c.bf16 %v932_v49, %v931_v48 }
 0x180   : > { %2958 = vmatpush3.bf16.msra.mxu0 %v2955_v53  ;;  %2740 = vmatprep.subr.bf16.mxu1 %v2739_v58  ;;  %v2995_v53 = vpack.c.bf16 %v1522_v51, %v1521_v50 }
 0x181   : > { %2960 = vmatprep.subr.bf16.mxu0 %v2959_v59 }
 0x183   : > { %2742 = vmatpush3.bf16.msra.mxu1 %v2739_v58  ;;  %v2779_v58 = vpack.c.bf16 %v934_v55, %v933_v54 }
 0x184   : > { %2962 = vmatpush3.bf16.msra.mxu0 %v2959_v59  ;;  %2744 = vmatprep.subr.bf16.mxu1 %v2743_v0  ;;  %v833_v59 = vld [vmem:[#allocation4 + $0xd] sm:$0xff] }
 0x185   : > { %2964 = vmatprep.subr.bf16.mxu0 %v2963_v1 }
 0x186   : > { %2266 = vmatmul.mubr.f32.vlgmr.msra.gmra.mrb[0].mxu1 %v737_v7  ;;  %v1607_v7 = vld [vmem:[#allocation5 + $0x6a0] sm:$0xff] }
 0x187   : > { %2746 = vmatpush3.bf16.msra.mxu1 %v2743_v0  ;;  %2300 = vmatprep.mubr.f32.mxu1 %v832_v10  ;;  %v1605_v0 = vld [vmem:[#allocation5 + $0x690] sm:$0xff]  ;;  %v1608_v10 = vld [vmem:[#allocation5 + $0x6a8] sm:$0xff] }
 0x188   : > { %2966 = vmatpush3.bf16.msra.mxu0 %v2963_v1  ;;  %2748 = vmatprep.subr.bf16.mxu1 %v2747_v6  ;;  %v1606_v1 = vld [vmem:[#allocation5 + $0x698] sm:$0xff]  ;;  %v3007_v14 = vpack.c.bf16 %v1608_v10, %v1607_v7 }
 0x189   : > { %2968 = vmatprep.subr.bf16.mxu0 %v2967_v11  ;;  %v3003_v4 = vpack.c.bf16 %v1606_v1, %v1605_v0 }
 0x18b   : > { %2511 = vmatmul.mubr.f32.vlgmr.msra.gmra.mrb[0].mxu0 %v1409_v13  ;;  %2750 = vmatpush3.bf16.msra.mxu1 %v2747_v6  ;;  %v1505_v6 = vld [vmem:[#allocation4 + $0x25] sm:$0xff] }
 0x18c   : > { %2970 = vmatpush3.bf16.msra.mxu0 %v2967_v11  ;;  %2545 = vmatprep.mubr.f32.mxu0 %v1504_v21  ;;  %v1600_v11 = vld [vmem:[#allocation4 + $0x1e] sm:$0xff] }
 0x18d   : > { %2752 = vmatprep.subr.bf16.mxu1 %v2751_v16  ;;  %2972 = vmatprep.subr.bf16.mxu0 %v2971_v17  ;;  %v941_v13 = vld [vmem:[#allocation5 + $0x350] sm:$0xff]  ;;  %v1612_v21 = vld [vmem:[#allocation5 + $0x6c8] sm:$0xff] }
 0x18f   : > { %2754 = vmatpush3.bf16.msra.mxu1 %v2751_v16  ;;  %v1609_v16 = vld [vmem:[#allocation5 + $0x6b0] sm:$0xff] }
 0x190   : > { %2974 = vmatpush3.bf16.msra.mxu0 %v2971_v17  ;;  %2756 = vmatprep.subr.bf16.mxu1 %v2755_v22  ;;  %v1610_v17 = vld [vmem:[#allocation5 + $0x6b8] sm:$0xff] }
 0x191   : > { %2976 = vmatprep.subr.bf16.mxu0 %v2975_v23  ;;  %v3011_v19 = vpack.c.bf16 %v1610_v17, %v1609_v16 }
 0x193   : > { %2758 = vmatpush3.bf16.msra.mxu1 %v2755_v22  ;;  %v2795_v22 = vpack.c.bf16 %v942_v20, %v941_v13 }
 0x194   : > { %2978 = vmatpush3.bf16.msra.mxu0 %v2975_v23  ;;  %2760 = vmatprep.subr.bf16.mxu1 %v2759_v28  ;;  %v3015_v23 = vpack.c.bf16 %v1612_v21, %v1611_v9 }
 0x195   : > { %2980 = vmatprep.subr.bf16.mxu0 %v2979_v29 }
 0x197   : > { %2762 = vmatpush3.bf16.msra.mxu1 %v2759_v28  ;;  %v2799_v28 = vpack.c.bf16 %v944_v25, %v943_v24 }
 0x198   : > { %2982 = vmatpush3.bf16.msra.mxu0 %v2979_v29  ;;  %2764 = vmatprep.subr.bf16.mxu1 %v2763_v34  ;;  %v3019_v29 = vpack.c.bf16 %v1614_v27, %v1613_v26 }
 0x199   : > { %2984 = vmatprep.subr.bf16.mxu0 %v2983_v35 }
 0x19b   : > { %2766 = vmatpush3.bf16.msra.mxu1 %v2763_v34  ;;  %v2803_v34 = vpack.c.bf16 %v946_v31, %v945_v30 }
 0x19c   : > { %2986 = vmatpush3.bf16.msra.mxu0 %v2983_v35  ;;  %2768 = vmatprep.subr.bf16.mxu1 %v2767_v40  ;;  %v3023_v35 = vpack.c.bf16 %v1616_v33, %v1615_v32 }
 0x19d   : > { %2988 = vmatprep.subr.bf16.mxu0 %v2987_v41 }
 0x19f   : > { %2770 = vmatpush3.bf16.msra.mxu1 %v2767_v40  ;;  %v1601_v40 = vld [vmem:[#allocation4 + $0x26] sm:$0xff] }
 0x1a0   : > { %2990 = vmatpush3.bf16.msra.mxu0 %v2987_v41  ;;  %2772 = vmatprep.subr.bf16.mxu1 %v2771_v46 }
 0x1a1   : > { %2992 = vmatprep.subr.bf16.mxu0 %v2991_v47 }
 0x1a3   : > { %2774 = vmatpush3.bf16.msra.mxu1 %v2771_v46 }
 0x1a4   : > { %2994 = vmatpush3.bf16.msra.mxu0 %v2991_v47  ;;  %2776 = vmatprep.subr.bf16.mxu1 %v2775_v52 }
 0x1a5   : > { %2996 = vmatprep.subr.bf16.mxu0 %v2995_v53 }
 0x1a6   : > { %2301 = vmatmul.mubr.f32.vlgmr.msra.gmra.mrb[0].mxu1 %v833_v59 }
 0x1a7   : > { %2778 = vmatpush3.bf16.msra.mxu1 %v2775_v52  ;;  %2335 = vmatprep.mubr.f32.mxu1 %v928_v60 }
 0x1a8   : > { %2998 = vmatpush3.bf16.msra.mxu0 %v2995_v53  ;;  %2780 = vmatprep.subr.bf16.mxu1 %v2779_v58 }
 0x1a9   : > { %3000 = vmatprep.subr.bf16.mxu0 %v2999_v61 }
 0x1ab   : > { %2546 = vmatmul.mubr.f32.vlgmr.msra.gmra.mrb[0].mxu0 %v1505_v6  ;;  %2782 = vmatpush3.bf16.msra.mxu1 %v2779_v58 }
 0x1ac   : > { %3002 = vmatpush3.bf16.msra.mxu0 %v2999_v61  ;;  %2580 = vmatprep.mubr.f32.mxu0 %v1600_v11 }
 0x1ad   : > { %2784 = vmatprep.subr.bf16.mxu1 %v2783_v2  ;;  %3004 = vmatprep.subr.bf16.mxu0 %v3003_v4 }
 0x1af   : > { %2786 = vmatpush3.bf16.msra.mxu1 %v2783_v2 }
 0x1b0   : > { %3006 = vmatpush3.bf16.msra.mxu0 %v3003_v4  ;;  %2788 = vmatprep.subr.bf16.mxu1 %v2787_v12 }
 0x1b1   : > { %3008 = vmatprep.subr.bf16.mxu0 %v3007_v14 }
 0x1b3   : > { %2790 = vmatpush3.bf16.msra.mxu1 %v2787_v12 }
 0x1b4   : > { %3010 = vmatpush3.bf16.msra.mxu0 %v3007_v14  ;;  %2792 = vmatprep.subr.bf16.mxu1 %v2791_v18 }
 0x1b5   : > { %3012 = vmatprep.subr.bf16.mxu0 %v3011_v19 }
 0x1b7   : > { %2794 = vmatpush3.bf16.msra.mxu1 %v2791_v18 }
 0x1b8   : > { %3014 = vmatpush3.bf16.msra.mxu0 %v3011_v19  ;;  %2796 = vmatprep.subr.bf16.mxu1 %v2795_v22 }
 0x1b9   : > { %3016 = vmatprep.subr.bf16.mxu0 %v3015_v23 }
 0x1bb   : > { %2798 = vmatpush3.bf16.msra.mxu1 %v2795_v22 }
 0x1bc   : > { %3018 = vmatpush3.bf16.msra.mxu0 %v3015_v23  ;;  %2800 = vmatprep.subr.bf16.mxu1 %v2799_v28 }
 0x1bd   : > { %3020 = vmatprep.subr.bf16.mxu0 %v3019_v29 }
 0x1bf   : > { %2802 = vmatpush3.bf16.msra.mxu1 %v2799_v28 }
 0x1c0   : > { %3022 = vmatpush3.bf16.msra.mxu0 %v3019_v29  ;;  %2804 = vmatprep.subr.bf16.mxu1 %v2803_v34 }
 0x1c1   : > { %3024 = vmatprep.subr.bf16.mxu0 %v3023_v35 }
 0x1c3   : > { %2806 = vmatpush3.bf16.msra.mxu1 %v2803_v34 }
 0x1c4   : > { %3026 = vmatpush3.bf16.msra.mxu0 %v3023_v35 }
 0x1c5   : > { %3028 = vmatprep.subr.bf16.mxu0 %v3027_v38 }
 0x1c6   : > { %2336 = vmatmul.mubr.f32.vlgmr.msra.gmra.mrb[0].mxu1 %v929_v39 }
 0x1c8   : > { %3030 = vmatpush3.bf16.msra.mxu0 %v3027_v38 }
 0x1cb   : > { %2581 = vmatmul.mubr.f32.vlgmr.msra.gmra.mrb[0].mxu0 %v1601_v40 }
 0x299   : > { %v2337_v41 = vpop.f32.mrb[0].mxu1 }
 0x29a   : > { %v1013_v42 = vpop.f32.mrb[1].mxu1 }
 0x29e   : > { %v2582_v43 = vpop.f32.mrb[0].mxu0 }
 0x29f   : > { %v3031_v44 = vadd.f32 %v2582_v43, %v2337_v41  ;;  %v1685_v45 = vpop.f32.mrb[1].mxu0 }
 0x2a0   : > { %v3032_v46 = vadd.f32 %v1685_v45, %v1013_v42 }
 0x2a1   : > { %v1833_v47 = vmul.f32 -1.442695, %v3031_v44 }
 0x2a2   : > { %v1832_v48 = vmul.f32 -1.442695, %v3032_v46 }
 0x2a3   : > { %3142 = vpow2.f32 %v1833_v47 }
 0x2a4   : > { %3144 = vpow2.f32 %v1832_v48 }
 0x2ad   : > { %v3143_v49 = vpop.eup %3142 }
 0x2ae   : > { %v3145_v50 = vpop.eup %3144  ;;  %v1703_v51 = vadd.f32 1.0, %v3143_v49 }
 0x2af   : > { %v1702_v52 = vadd.f32 1.0, %v3145_v50 }
 0x2b0   : > { %3146 = vrcp.f32 %v1703_v51 }
 0x2b1   : > { %3148 = vrcp.f32 %v1702_v52 }
 0x2ba   : > { %v3147_v53 = vpop.eup %3146 }
 0x2bb   : > { %v3149_v54 = vpop.eup %3148  ;;  %1709 = vst [vmem:[%s190_s27 + $0x8] sm:$0xff] %v3147_v53 }
 0x2bc   : > { %1708 = vst [vmem:[%s190_s27] sm:$0xff] %v3149_v54 }
 0x2bd   : > { %3221 = shalt.err (!%p3218_p5)
}
 0x2be   : > { %s3222_s19 = scalar_lea.hbm %s3594_s3, 256  ;;  %s3226_s5 = scalar_lea.hbm %s3647_s2, 512 }
 0x2bf   : > { %p3223_p9 = scmp.ne.s32.totalorder %s3594_s3, %s3222_s19  ;;  %p3227_p7 = scmp.lt.u32.totalorder %s3594_s3, %s3647_s2 }
 0x2c0   : > { %p3228_p3 = scmp.lt.u32.totalorder %s3226_s5, %s3222_s19  ;;  %p3230_p13 = scmp.lt.u32.totalorder %s3222_s19, %s3594_s3 }
 0x2c1   : > { %p3224_p1 = pnand %p3223_p9, %p3422_p10 }
 0x2c2   : > { %p3229_p4 = por %p3228_p3, %p3227_p7 }
 0x2c3   : > { %p3225_p2 = pneg %p3224_p1 }
 0x2c4   : > { %p3231_p6 = por %p3230_p13, %p3229_p4 }
 0x2c6   : > { %p3232_p8 = pnand %p3231_p6, %p3225_p2 }
 0x2c8   : > { %3235 = shalt.err (!%p3232_p8)
}
 0x2c9   : > { %s3309_s24 = smov 128   ;;  %s3310_s22 = smov 8  }
 0x2ca   : > { %3063 = dma.vmem_to_hbm [thread:$0]  (%p3422_p10), %s3596_s23, 256, %s3594_s3, %s1711_s8, %s3309_s24, %s3309_s24, %s3310_s22  }
 0x2cb PF: > { %s1739_s27 = sand.u32 1, %s3274_s9   ;;  %p3665_p12 = scmp.ne.s32.totalorder %s3655_s20, 0 }
 0x2cc   : > { %p3666_p11 = scmp.ge.s32.totalorder %s3294_s14, 2  ;;  %s1740_s29 = scalar_lea.sflag [#allocation7], %s1739_s27 }
 0x2ce   : > { %p3074_p0 = pnand %p3666_p11, %p3665_p12 }
 0x2d0   : > { %3269 = dma.done.wait (!%p3074_p0), %s1740_s29, 256  }
 0x2d1   : > { %3271 = vsyncadd (!%p3074_p0), %s1740_s29, 4294967040  ;;  %s19_s14 = sadd.s32 1, %s3294_s14   ;;  %s3667_s9 = smov %s3278_s10 }
 0x2d2   : > { %p16_p5 = scmp.ge.s32.totalorder %s19_s14, 4   ;;  %s3668_s10 = smov %s3282_s11 }
 0x2d3   : > { %s3669_s11 = smov %s3431_s28  ;;  %s3670_s12 = smov %s3290_s13 }
 0x2d4   : > { %s3671_s13 = smov %s3673_s25  ;;  %18 = sbr.rel (!%p16_p5) target bundleno = 7 (0x7), region = 95 }
 0x2db   :  { %1745 = vsyncpa [#allocation6], 1 }
 0x2dc   :  { %1747 = vsyncpa [#allocation6 + $0x1], 1 }
 0x2dd   :  { %1748 = vsyncpa [#allocation9], 1 }
 0x2de   :  { %1750 = vsyncpa [#allocation9 + $0x1], 1 }
 0x2df   :  { %1751 = vsyncpa [#allocation7], 1 }
 0x2e0   :  { %1753 = vsyncpa [#allocation7 + $0x1], 1 }

</bundles_post_ra>
